<compile_context>
chip_gen: v5e
topology: v5e:2x2
jax: 0.10.0
libtpu: 0.0.40
codegen_flags: <defaults>
</compile_context>

<pallas_src>
import jax
import jax.numpy as jnp
from jax.experimental import pallas as pl
from jax.experimental.pallas import tpu as pltpu


def _round_up(x, m):
    return (x + m - 1) // m * m


def _cdiv(a, b):
    return (a + b - 1) // b


def _vmem_capacity_bytes():
    """Best-effort VMEM capacity query; conservative (v7x) fallback."""
    try:
        info = pltpu.get_tpu_info()
        cap = getattr(info, "vmem_capacity_bytes", None)
        if cap:
            return int(cap)
    except Exception:
        pass
    return 64 * 1024 * 1024


def lm_kernel(emb_ref, encb_ref, mask_ref, wih_ref, wdec_ref, bdec_ref,
              out_ref, h_ref):
    j = pl.program_id(2)

    # Encoder runs once per (batch, seq-tile); result cached in VMEM scratch.
    # Correct only because the vocab axis is the innermost grid axis and marked
    # "arbitrary" -- do not reorder the grid without revisiting this.
    @pl.when(j == 0)
    def _():
        acc = jnp.dot(emb_ref[...], wih_ref[...],
                      preferred_element_type=jnp.float32)        # [ts, H] f32
        h = jnp.tanh(acc + encb_ref[...])                        # + enc bias (1, H)
        h = h * mask_ref[...]                                    # mask (ts, 1) bcast
        h_ref[...] = h.astype(h_ref.dtype)                       # bf16 cache

    # Decoder: one lane-dense vocab slab per j; fp32 accumulation, bf16 (or
    # requested dtype) writeback.
    out_ref[...] = (
        jnp.dot(h_ref[...], wdec_ref[...], preferred_element_type=jnp.float32)
        + bdec_ref[...]
    ).astype(out_ref.dtype)


def language_model_forward(x_tokens, encode_hidden, mask, params, *,
                           tile_s=512, tile_n=1024, out_dtype=jnp.bfloat16):
    """x_tokens: int32 [B, S]; encode_hidden: f32 [B, H]; mask: f32 [B, S] or None."""
    embed_tbl = params["embed"]        # [V, E]
    w_ih = params["w_ih"]              # [E, H]
    w_hh = params["w_hh"]              # [H, H]
    b_h = params["b_h"]                # [1, H]
    w_dec = params["w_dec"]            # [H, V]
    b_dec = params["b_dec"]            # [1, V]

    B, S = x_tokens.shape
    E, H = w_ih.shape
    V = w_dec.shape[1]

    out_bytes = jnp.dtype(out_dtype).itemsize

    # ---- Generation-aware tile selection ----
    # Clamp tiles to (padded) problem size, keep sublane/lane alignment.
    tile_s = min(tile_s, _round_up(S, 8))
    tile_n = min(tile_n, _round_up(V, 128))

    def vmem_est(ts, tn):
        return (2 * ts * tn * out_bytes            # output slab (double-buffered)
                + 2 * (H * tn * 2 + tn * 4)        # W_dec / b_dec slabs
                + 2 * (ts * E * 2 + H * 4 + ts * 4)  # emb / enc-bias / mask tiles
                + 2 * E * H * 2                    # W_ih (resident)
                + ts * H * 2)                      # hidden scratch (bf16)

    vmem_cap = _vmem_capacity_bytes()              # 64 MiB on v7x, 128 MiB v5e/v6e
    vmem_budget = int(vmem_cap * 0.6)
    while vmem_est(tile_s, tile_n) > vmem_budget and tile_n > 256:
        tile_n = max(256, tile_n // 2)
    while vmem_est(tile_s, tile_n) > vmem_budget and tile_s > 8:
        tile_s = max(8, _round_up(tile_s // 2, 8))

    # v7x has 2 TensorCores sharded over the "parallel" axes: make sure there
    # are at least 2 (b, s)-tiles of work when possible.
    if B * _cdiv(S, tile_s) < 2 and S > 8:
        tile_s = max(8, _round_up(_cdiv(S, 2), 8))

    S_pad = _round_up(S, tile_s)
    V_pad = _round_up(V, tile_n)

    # ---- Glue (layout plumbing only) ----
    emb = jnp.take(embed_tbl, x_tokens, axis=0).astype(jnp.bfloat16)   # [B, S, E]
    enc_proj = (encode_hidden @ w_hh + b_h).astype(jnp.float32)        # [B, H]
    enc_proj = enc_proj[:, None, :]                                    # [B, 1, H]
    if mask is None:
        mask_c = jnp.ones((B, S, 1), jnp.float32)
    else:
        mask_c = mask.astype(jnp.float32)[:, :, None]                  # [B, S, 1]

    if S_pad != S:
        emb = jnp.pad(emb, ((0, 0), (0, S_pad - S), (0, 0)))
        mask_c = jnp.pad(mask_c, ((0, 0), (0, S_pad - S), (0, 0)))

    w_ih_b = w_ih.astype(jnp.bfloat16)
    w_dec_b = w_dec.astype(jnp.bfloat16)
    b_dec_p = b_dec.astype(jnp.float32)
    if V_pad != V:
        w_dec_b = jnp.pad(w_dec_b, ((0, 0), (0, V_pad - V)))
        b_dec_p = jnp.pad(b_dec_p, ((0, 0), (0, V_pad - V)))

    s_tiles = S_pad // tile_s
    v_tiles = V_pad // tile_n
    grid = (B, s_tiles, v_tiles)

    # Advisory cost estimate for the XLA scheduler (W_dec counted once per
    # (b, s)-tile, since it is re-streamed on every pass over the vocab axis).
    flops = 2 * B * S_pad * E * H + 2 * B * S_pad * H * V_pad
    bytes_accessed = (B * S_pad * E * 2                 # embeddings
                      + B * H * 4 + B * S_pad * 4       # enc bias + mask
                      + E * H * 2                       # W_ih
                      + B * s_tiles * H * V_pad * 2     # W_dec re-stream
                      + B * s_tiles * V_pad * 4         # b_dec re-stream
                      + B * S_pad * V_pad * out_bytes)  # logits writeback
    cost = pl.CostEstimate(flops=int(flops),
                           transcendentals=int(B * S_pad * H),
                           bytes_accessed=int(bytes_accessed))

    vmem_limit = min(vmem_cap,
                     max(int(vmem_est(tile_s, tile_n) * 1.5), 16 * 1024 * 1024))

    out = pl.pallas_call(
        lm_kernel,
        out_shape=jax.ShapeDtypeStruct((B, S_pad, V_pad), out_dtype),
        grid_spec=pltpu.PrefetchScalarGridSpec(
            num_scalar_prefetch=0,
            grid=grid,
            in_specs=[
                pl.BlockSpec((None, tile_s, E), lambda b, s, j: (b, s, 0)),  # emb
                pl.BlockSpec((None, 1, H),      lambda b, s, j: (b, 0, 0)),  # enc bias
                pl.BlockSpec((None, tile_s, 1), lambda b, s, j: (b, s, 0)),  # mask
                pl.BlockSpec((E, H),            lambda b, s, j: (0, 0)),     # W_ih
                pl.BlockSpec((H, tile_n),       lambda b, s, j: (0, j)),     # W_dec slab
                pl.BlockSpec((1, tile_n),       lambda b, s, j: (0, j)),     # b_dec slab
            ],
            out_specs=pl.BlockSpec((None, tile_s, tile_n),
                                   lambda b, s, j: (b, s, j)),
            scratch_shapes=[pltpu.VMEM((tile_s, H), jnp.bfloat16)],
        ),
        compiler_params=pltpu.CompilerParams(
            dimension_semantics=("parallel", "parallel", "arbitrary"),
            vmem_limit_bytes=vmem_limit),
        cost_estimate=cost,
    )(emb, enc_proj, mask_c, w_ih_b, w_dec_b, b_dec_p)

    return out[:, :S, :V]


def init_params(key, vocab, E, H):
    ks = jax.random.split(key, 6)
    scale = 0.02
    return {
        "embed": scale * jax.random.normal(ks[0], (vocab, E), jnp.float32),
        "w_ih":  scale * jax.random.normal(ks[1], (E, H), jnp.float32),
        "w_hh":  scale * jax.random.normal(ks[2], (H, H), jnp.float32),
        "b_h":   jnp.zeros((1, H), jnp.float32),
        "w_dec": scale * jax.random.normal(ks[3], (H, vocab), jnp.float32),
        "b_dec": jnp.zeros((1, vocab), jnp.float32),
    }


def reference_forward(x_tokens, encode_hidden, mask, params):
    emb = jnp.take(params["embed"], x_tokens, axis=0)                   # [B,S,E]
    h = jnp.tanh(emb @ params["w_ih"]
                 + (encode_hidden @ params["w_hh"])[:, None, :]
                 + params["b_h"])
    if mask is not None:
        h = h * mask[:, :, None]
    return h @ params["w_dec"] + params["b_dec"]


if __name__ == "__main__":
    # Deliberately tile-unaligned S and V to exercise the padding/tail path.
    B, S, E, H, V = 2, 200, 128, 128, 1000
    key = jax.random.PRNGKey(0)
    k_tok, k_hid, k_par = jax.random.split(key, 3)

    x = jax.random.randint(k_tok, (B, S), 0, V, dtype=jnp.int32)
    encode_hidden = jax.random.normal(k_hid, (B, H), jnp.float32)
    mask = jnp.ones((B, S), jnp.float32).at[:, -3:].set(0.0)   # mask last 3 positions

    params = init_params(k_par, V, E, H)

    out = language_model_forward(x, encode_hidden, mask, params)  # default bf16 logits
    out = jax.block_until_ready(out)

    ref = reference_forward(x, encode_hidden, mask, params)
    assert out.shape == (B, S, V)
    out_f32 = out.astype(jnp.float32)
    max_err = float(jnp.max(jnp.abs(out_f32 - ref)))
    # bf16 matmul inputs + bf16 logits with fp32 accumulation -> loosened tolerance.
    assert jnp.allclose(out_f32, ref, atol=3e-3, rtol=5e-2), \
        f"mismatch vs reference, max abs err {max_err}"

    print("KERNEL_OK")
</pallas_src>

<mosaic_0001>
module attributes {stable_mosaic.version = 11 : i64} {
  func.func @lm_kernel(%arg0: i32, %arg1: i32, %arg2: i32, %arg3: memref<1x200x128xbf16, #tpu.memory_space<vmem>>, %arg4: memref<1x1x128xf32, #tpu.memory_space<vmem>>, %arg5: memref<1x200x1xf32, #tpu.memory_space<vmem>>, %arg6: memref<128x128xbf16, #tpu.memory_space<vmem>>, %arg7: memref<128x1024xbf16, #tpu.memory_space<vmem>>, %arg8: memref<1x1024xf32, #tpu.memory_space<vmem>>, %arg9: memref<1x200x1024xbf16, #tpu.memory_space<vmem>>, %arg10: memref<200x128xbf16, #tpu.memory_space<vmem>>) attributes {dimension_semantics = [#tpu.dimension_semantics<parallel>, #tpu.dimension_semantics<parallel>, #tpu.dimension_semantics<arbitrary>], iteration_bounds = array<i64: 2, 1, 1>, scalar_prefetch = 0 : i64, scratch_operands = 1 : i64, tpu.core_type = #tpu.core_type<tc>, window_params = [{transform_indices = @transform_0, window_bounds = array<i64: 1, 200, 128>}, {transform_indices = @transform_1, window_bounds = array<i64: 1, 1, 128>}, {transform_indices = @transform_2, window_bounds = array<i64: 1, 200, 1>}, {pipeline_mode = #tpu.pipeline_mode<synchronous>, transform_indices = @transform_3, window_bounds = array<i64: 128, 128>}, {transform_indices = @transform_4, window_bounds = array<i64: 128, 1024>}, {transform_indices = @transform_5, window_bounds = array<i64: 1, 1024>}, {transform_indices = @transform_6, window_bounds = array<i64: 1, 200, 1024>}]} {
    %c0_i32 = arith.constant 0 : i32
    %0 = arith.cmpi eq, %arg2, %c0_i32 : i32
    %1 = arith.extui %0 : i1 to i32
    %c0_i32_0 = arith.constant 0 : i32
    %2 = arith.cmpi ne, %1, %c0_i32_0 : i32
    scf.if %2 {
      %c0_9 = arith.constant 0 : index
      %c0_10 = arith.constant 0 : index
      %c0_11 = arith.constant 0 : index
      %13 = vector.load %arg3[%c0_9, %c0_10, %c0_11] : memref<1x200x128xbf16, #tpu.memory_space<vmem>>, vector<1x200x128xbf16>
      %14 = vector.shape_cast %13 : vector<1x200x128xbf16> to vector<200x128xbf16>
      %c0_12 = arith.constant 0 : index
      %c0_13 = arith.constant 0 : index
      %15 = vector.load %arg6[%c0_12, %c0_13] : memref<128x128xbf16, #tpu.memory_space<vmem>>, vector<128x128xbf16>
      %cst_14 = arith.constant dense<0.000000e+00> : vector<200x128xf32>
      %16 = tpu.matmul %14, %15, %cst_14 {dimension_numbers = #tpu.dot_dimension_numbers<[1], [0], [0], [1], [0, 0, 1, 1], [], []>} : vector<200x128xbf16>, vector<128x128xbf16>, vector<200x128xf32> -> vector<200x128xf32>
      %c0_15 = arith.constant 0 : index
      %c0_16 = arith.constant 0 : index
      %c0_17 = arith.constant 0 : index
      %17 = vector.load %arg4[%c0_15, %c0_16, %c0_17] : memref<1x1x128xf32, #tpu.memory_space<vmem>>, vector<1x1x128xf32>
      %18 = vector.shape_cast %17 : vector<1x1x128xf32> to vector<1x128xf32>
      %19 = vector.broadcast %18 : vector<1x128xf32> to vector<200x128xf32>
      %20 = arith.addf %16, %19 : vector<200x128xf32>
      %21 = math.tanh %20 : vector<200x128xf32>
      %c0_18 = arith.constant 0 : index
      %c0_19 = arith.constant 0 : index
      %c0_20 = arith.constant 0 : index
      %22 = vector.load %arg5[%c0_18, %c0_19, %c0_20] : memref<1x200x1xf32, #tpu.memory_space<vmem>>, vector<1x200x1xf32>
      %23 = vector.shape_cast %22 : vector<1x200x1xf32> to vector<200x1xf32>
      %24 = vector.broadcast %23 : vector<200x1xf32> to vector<200x128xf32>
      %25 = arith.mulf %21, %24 : vector<200x128xf32>
      %26 = arith.truncf %25 : vector<200x128xf32> to vector<200x128xbf16>
      %c0_21 = arith.constant 0 : index
      %c0_22 = arith.constant 0 : index
      %27 = vector.load %arg10[%c0_21, %c0_22] : memref<200x128xbf16, #tpu.memory_space<vmem>>, vector<200x128xbf16>
      tpu.vector_store %arg10[%c0_21, %c0_22], %26 {strides = array<i32>} : memref<200x128xbf16, #tpu.memory_space<vmem>>, vector<200x128xbf16>,
    } else {
    }
    %c0 = arith.constant 0 : index
    %c0_1 = arith.constant 0 : index
    %3 = vector.load %arg10[%c0, %c0_1] : memref<200x128xbf16, #tpu.memory_space<vmem>>, vector<200x128xbf16>
    %c0_2 = arith.constant 0 : index
    %c0_3 = arith.constant 0 : index
    %4 = vector.load %arg7[%c0_2, %c0_3] : memref<128x1024xbf16, #tpu.memory_space<vmem>>, vector<128x1024xbf16>
    %cst = arith.constant dense<0.000000e+00> : vector<200x1024xf32>
    %5 = tpu.matmul %3, %4, %cst {dimension_numbers = #tpu.dot_dimension_numbers<[1], [0], [0], [1], [0, 0, 1, 1], [], []>} : vector<200x128xbf16>, vector<128x1024xbf16>, vector<200x1024xf32> -> vector<200x1024xf32>
    %c0_4 = arith.constant 0 : index
    %c0_5 = arith.constant 0 : index
    %6 = vector.load %arg8[%c0_4, %c0_5] : memref<1x1024xf32, #tpu.memory_space<vmem>>, vector<1x1024xf32>
    %7 = vector.broadcast %6 : vector<1x1024xf32> to vector<200x1024xf32>
    %8 = arith.addf %5, %7 : vector<200x1024xf32>
    %9 = arith.truncf %8 : vector<200x1024xf32> to vector<200x1024xbf16>
    %c0_6 = arith.constant 0 : index
    %c0_7 = arith.constant 0 : index
    %c0_8 = arith.constant 0 : index
    %10 = vector.load %arg9[%c0_6, %c0_7, %c0_8] : memref<1x200x1024xbf16, #tpu.memory_space<vmem>>, vector<1x200x1024xbf16>
    %11 = vector.shape_cast %10 : vector<1x200x1024xbf16> to vector<200x1024xbf16>
    %12 = vector.shape_cast %9 : vector<200x1024xbf16> to vector<1x200x1024xbf16>
    tpu.vector_store %arg9[%c0_6, %c0_7, %c0_8], %12 {strides = array<i32>} : memref<1x200x1024xbf16, #tpu.memory_space<vmem>>, vector<1x200x1024xbf16>,
    return
  }
  func.func @transform_0(%arg0: i32, %arg1: i32, %arg2: i32) -> (i32, i32, i32) {
    %c0_i32 = arith.constant 0 : i32
    %c0_i32_0 = arith.constant 0 : i32
    return %arg0, %arg1, %c0_i32 : i32, i32, i32
  }
  func.func @transform_1(%arg0: i32, %arg1: i32, %arg2: i32) -> (i32, i32, i32) {
    %c0_i32 = arith.constant 0 : i32
    %c0_i32_0 = arith.constant 0 : i32
    %c0_i32_1 = arith.constant 0 : i32
    return %arg0, %c0_i32, %c0_i32_0 : i32, i32, i32
  }
  func.func @transform_2(%arg0: i32, %arg1: i32, %arg2: i32) -> (i32, i32, i32) {
    %c0_i32 = arith.constant 0 : i32
    %c0_i32_0 = arith.constant 0 : i32
    return %arg0, %arg1, %c0_i32 : i32, i32, i32
  }
  func.func @transform_3(%arg0: i32, %arg1: i32, %arg2: i32) -> (i32, i32) {
    %c0_i32 = arith.constant 0 : i32
    %c0_i32_0 = arith.constant 0 : i32
    %c0_i32_1 = arith.constant 0 : i32
    return %c0_i32, %c0_i32_0 : i32, i32
  }
  func.func @transform_4(%arg0: i32, %arg1: i32, %arg2: i32) -> (i32, i32) {
    %c0_i32 = arith.constant 0 : i32
    %c0_i32_0 = arith.constant 0 : i32
    return %c0_i32, %arg2 : i32, i32
  }
  func.func @transform_5(%arg0: i32, %arg1: i32, %arg2: i32) -> (i32, i32) {
    %c0_i32 = arith.constant 0 : i32
    %c0_i32_0 = arith.constant 0 : i32
    return %c0_i32, %arg2 : i32, i32
  }
  func.func @transform_6(%arg0: i32, %arg1: i32, %arg2: i32) -> (i32, i32, i32) {
    %c0_i32 = arith.constant 0 : i32
    return %arg0, %arg1, %arg2 : i32, i32, i32
  }
}

</mosaic_0001>

<bundles_post_ra>
// kernel: tpu_custom_call.1
= control target key start
LH: loop header
LB: loop body
LE: loop exit
PB: predicated region body
PF: predicated region fallthrough
CT: control target
= control target key end

     0   :  { %11 = vsyncpa [#allocation4], 0  ;;  %s3928_s0 = inlined_call_operand.vmem [shape: bf16[2,200,128], index: 0, kind: input, shape index: {}]   ;;  %s3929_s1 = inlined_call_operand.vmem [shape: f32[2,1,128], index: 1, kind: input, shape index: {}]   ;;  %s3930_s2 = inlined_call_operand.vmem [shape: f32[2,200,1], index: 2, kind: input, shape index: {}]   ;;  %s3931_s3 = inlined_call_operand.vmem [shape: bf16[128,128], index: 3, kind: input, shape index: {}]   ;;  %s3932_s4 = inlined_call_operand.hbm [shape: bf16[128,1024], index: 4, kind: input, shape index: {}]   ;;  %s3933_s5 = inlined_call_operand.vmem [shape: f32[1,1024], index: 5, kind: input, shape index: {}]   ;;  %s3934_s6 = inlined_call_operand.hbm [shape: bf16[2,200,1024], index: 6, kind: output, shape index: {}]  }
   0x1   :  { %12 = vsyncpa [#allocation5], 0 }
   0x2   :  { %14 = vsyncpa [#allocation5 + $0x1], 0  ;;  %s3199_s21 = smov 0   ;;  %s3201_s22 = smov 0  }
   0x3   :  { %s3203_s23 = smov 0   ;;  %s3205_s24 = smov 0  }
   0x4   :  { %s3207_s25 = smov 0   ;;  %s3209_s26 = smov 0  }
   0x5 LB: > { %s2327_s27 = sadd.s32 4294967295, %s3156_s26   ;;  %s2328_s28 = sadd.s32 4294967294, %s3156_s26   ;;  %s3156_s26 = sphi %s3209_s26, %s20_s26   ;;  %s3152_s25 = sphi %s3207_s25, %s3941_s25   ;;  %s3148_s24 = sphi %s3205_s24, %s3940_s24   ;;  %s3144_s23 = sphi %s3203_s23, %s3939_s23   ;;  %s3140_s22 = sphi %s3201_s22, %s3938_s22   ;;  %s3136_s21 = sphi %s3199_s21, %s3937_s21  }
   0x6   : > { %s39_s29 = sadd.s32 1, %s3152_s25  ;;  %s205_s30 = sadd.s32 1, %s3144_s23 }
   0x7   : > { %p41_p0 = scmp.ge.s32.totalorder %s39_s29, 2  ;;  %p215_p1 = scmp.ne.s32.totalorder %s3144_s23, %s3140_s22 }
   0x8   : > { %p216_p2 = scmp.eq.s32.totalorder %s2327_s27, 1  ;;  %p221_p3 = scmp.ne.s32.totalorder %s3140_s22, %s3136_s21 }
   0x9   : > { %s3943_s29 = smov (%p41_p0, %s39_s29), 0  ;;  %p222_p5 = scmp.eq.s32.totalorder %s2328_s28, 1 }
   0xa   : > { %p3239_p4 = por %p216_p2, %p215_p1  ;;  %s198_s8 = ssub.s32 %s3152_s25, %s3943_s29 }
   0xb   : > { %p2329_p6 = scmp.ge.s32.totalorder %s3156_s26, 1  ;;  %p203_p7 = scmp.eq.s32.totalorder %s198_s8, 0 }
   0xc   : > { %p3246_p8 = por %p222_p5, %p221_p3  ;;  %p229_p9 = scmp.lt.s32.totalorder %s3156_s26, 3 }
   0xd   : > { %s3252_s10 = scalar_select %p203_p7, %s3144_s23, %s205_s30  }
   0xe   : > { %p230_p10 = pnand %p2329_p6, %p229_p9  ;;  %p2933_p11 = scmp.eq.s32.totalorder %s2327_s27, 0 }
   0xf   : > { %s246_s13 = sshll.u32 %s3932_s4, 4  ;;  %s3158_s14 = smov [#allocation3]   ;;  %s247_s13 = int_to_ptr.hbm [resolvable:$true] %s246_s13 }
  0x10   : > { %p2925_p12 = pneg %p230_p10  ;;  %s248_s15 = sshll.u32 %s3158_s14, 4  ;;  %s249_s15 = int_to_ptr.vmem [resolvable:$true] %s248_s15 }
  0x11   : > { %s3159_s16 = smov 512   ;;  %s3160_s17 = smov 32  }
  0x12   : > { %p2926_p13 = pnand %p2933_p11, %p2925_p12  ;;  %304 = sbr.rel (%p230_p10) target bundleno = 755 (0x2f3), region = 44 }
  0x14   : > { %2928 = dma.hbm_to_vmem [thread:$0]  (!%p2926_p13), %s247_s13, 8192, %s249_s15, [#allocation4], %s3159_s16, %s3159_s16, %s3160_s17  }
  0x17   : > { %3127 = dma.done.wait (%p2933_p11), [#allocation4], 8192  }
  0x18   : > { %3129 = vsyncadd (%p2933_p11), [#allocation4], 4294959104  ;;  %p356_p0 = scmp.lt.s32.totalorder %s3148_s24, 1  ;;  %v3161_v0 = vmov 0   ;;  %v2743_v2 = vld [vmem:[%s3931_s3 + $0x38] sm:$0xff]  ;;  %v2742_v4 = vld [vmem:[%s3931_s3 + $0x30] sm:$0xff] }
  0x19   : > { %2990 = vset.pattern.permute.xlu0 %v3161_v0  ;;  %2991 = vset.pattern.permute.xlu1 %v3161_v0  ;;  %v2741_v6 = vld [vmem:[%s3931_s3 + $0x28] sm:$0xff]  ;;  %v2740_v9 = vld [vmem:[%s3931_s3 + $0x20] sm:$0xff]  ;;  %v2739_v11 = vld [vmem:[%s3931_s3 + $0x18] sm:$0xff]  ;;  %s352_s8 = sand.u32 1, %s3140_s22   ;;  %s2918_s14 = smul.u32 800, %s3148_s24 }
  0x1a   : > { %s3259_s18 = scalar_select %p356_p0, %s3148_s24, 1  ;;  %2992 = vset.pattern.permute.xlu2 %v3161_v0  ;;  %559 = vmatpush.bf16.msra.mxu0 %v2743_v2  ;;  %v2738_v13 = vld [vmem:[%s3931_s3 + $0x10] sm:$0xff]  ;;  %v2737_v16 = vld [vmem:[%s3931_s3 + $0x8] sm:$0xff]  ;;  %v2736_v19 = vld [vmem:[%s3931_s3] sm:$0xff] }
  0x1b   : > { %2891 = vmatpush.bf16.msra.mxu1 %v2743_v2  ;;  %2892 = vmatpush.bf16.msra.mxu2 %v2743_v2  ;;  %v2691_v49 = vld [vmem:[#allocation3 + $0x1c0] sm:$0xf]  ;;  %v2813_v51 = vld [vmem:[#allocation3 + $0x1cc] sm:$0xf]  ;;  %v2699_v60 = vld [vmem:[#allocation3 + $0x1c8] sm:$0xf]  ;;  %s2186_s17 = scalar_lea.hbm %s3934_s6, %s2918_s14 }
  0x1c   : > { %s2917_s19 = smul.u32 200, %s3259_s18  ;;  %s367_s28 = scalar_lea.vmem %s3929_s1, %s3259_s18  ;;  %2893 = vmatpush.bf16.msra.mxu3 %v2743_v2  ;;  %v2816_v50 = vld [vmem:[#allocation3 + $0x1dc] sm:$0xf0]  ;;  %v2701_v53 = vld [vmem:[#allocation3 + $0x1e8] sm:$0xf0] }
  0x1d   : > { %s2916_s15 = smul.u32 100, %s3259_s18  ;;  %v2692_v52 = vor.u32 %v2816_v50, %v2691_v49  ;;  %v2704_v54 = vor.u32 %v2813_v51, %v2701_v53  ;;  %v2659_v55 = vld [vmem:[#allocation3 + $0x180] sm:$0xf]  ;;  %v2805_v57 = vld [vmem:[#allocation3 + $0x18c] sm:$0xf]  ;;  %s2189_s24 = sshll.u32 %s2186_s17, 4  ;;  %s2190_s24 = int_to_ptr.hbm [resolvable:$true] %s2189_s24 }
  0x1e   : > { %s3269_s11 = scalar_lea.vmem %s3930_s2, %s2917_s19  ;;  %560 = vmatpush.bf16.msra.mxu0 %v2742_v4  ;;  %v2808_v56 = vld [vmem:[#allocation3 + $0x19c] sm:$0xf0]  ;;  %v2669_v59 = vld [vmem:[#allocation3 + $0x1a8] sm:$0xf0]  ;;  %v2817_v61 = vld [vmem:[#allocation3 + $0x1e4] sm:$0xf0] }
  0x1f   : > { %v657_v1 = vld [vmem:[%s3269_s11] sm:$0xff]  ;;  %v659_v3 = vld [vmem:[%s3269_s11 + $0x10] sm:$0xff]  ;;  %v658_v5 = vld [vmem:[%s3269_s11 + $0x8] sm:$0xff]  ;;  %2894 = vmatpush.bf16.msra.mxu1 %v2742_v4  ;;  %2895 = vmatpush.bf16.msra.mxu2 %v2742_v4  ;;  %s3310_s27 = scalar_lea.vmem %s3928_s0, %s2916_s15  ;;  %v2660_v58 = vor.u32 %v2808_v56, %v2659_v55  ;;  %v2672_v62 = vor.u32 %v2805_v57, %v2669_v59  ;;  %v2700_v63 = vor.u32 %v2817_v61, %v2699_v60  ;;  %s3488_s12 = smul.u32 800, %s352_s8 }
  0x20   : > { %684 = vperm.xlu0 %2990, %v657_v1   ;;  %694 = vperm.xlu1 %2991, %v659_v3   ;;  %v661_v7 = vld [vmem:[%s3269_s11 + $0x20] sm:$0xff]  ;;  %v660_v8 = vld [vmem:[%s3269_s11 + $0x18] sm:$0xff]  ;;  %v663_v10 = vld [vmem:[%s3269_s11 + $0x30] sm:$0xff]  ;;  %s2170_s20 = scalar_lea.sflag [#allocation5], %s352_s8 }
  0x21   : > { %2896 = vmatpush.bf16.msra.mxu3 %v2742_v4  ;;  %704 = vperm.xlu2 %2992, %v661_v7   ;;  %v664_v12 = vld [vmem:[%s3269_s11 + $0x38] sm:$0xff]  ;;  %v662_v14 = vld [vmem:[%s3269_s11 + $0x28] sm:$0xff]  ;;  %v667_v17 = vld [vmem:[%s3269_s11 + $0x50] sm:$0xff]  ;;  %s3503_s13 = scalar_lea.vmem [#allocation6], %s3488_s12 }
  0x22   : > { %561 = vmatpush.bf16.msra.mxu0 %v2741_v6  ;;  %v666_v15 = vld [vmem:[%s3269_s11 + $0x48] sm:$0xff]  ;;  %v665_v18 = vld [vmem:[%s3269_s11 + $0x40] sm:$0xff]  ;;  %v2734_v24 = vld [vmem:[%s3310_s27 + $0x50] sm:$0xff]  ;;  %s2187_s19 = sshll.u32 %s3503_s13, 4  ;;  %s2188_s19 = int_to_ptr.vmem [resolvable:$true] %s2187_s19 }
  0x23   : > { %2897 = vmatpush.bf16.msra.mxu1 %v2741_v6  ;;  %2898 = vmatpush.bf16.msra.mxu2 %v2741_v6  ;;  %v669_v20 = vld [vmem:[%s3269_s11 + $0x60] sm:$0xff]  ;;  %v670_v25 = vld [vmem:[%s3269_s11 + $0x68] sm:$0xff]  ;;  %v668_v26 = vld [vmem:[%s3269_s11 + $0x58] sm:$0xff] }
  0x24   : > { %v2724_v21 = vld [vmem:[%s3310_s27] sm:$0xff]  ;;  %v672_v27 = vld [vmem:[%s3269_s11 + $0x78] sm:$0xff]  ;;  %v671_v29 = vld [vmem:[%s3269_s11 + $0x70] sm:$0xff] }
  0x25   : > { %2899 = vmatpush.bf16.msra.mxu3 %v2741_v6  ;;  %v2728_v22 = vld [vmem:[%s3310_s27 + $0x20] sm:$0xff]  ;;  %v675_v30 = vld [vmem:[%s3269_s11 + $0x90] sm:$0xff]  ;;  %v2725_v31 = vld [vmem:[%s3310_s27 + $0x8] sm:$0xff] }
  0x26   : > { %562 = vmatpush.bf16.msra.mxu0 %v2740_v9  ;;  %v2732_v23 = vld [vmem:[%s3310_s27 + $0x40] sm:$0xff]  ;;  %v2729_v32 = vld [vmem:[%s3310_s27 + $0x28] sm:$0xff]  ;;  %v2735_v34 = vld [vmem:[%s3310_s27 + $0x58] sm:$0xff] }
  0x27   : > { %2900 = vmatpush.bf16.msra.mxu1 %v2740_v9  ;;  %2901 = vmatpush.bf16.msra.mxu2 %v2740_v9  ;;  %v673_v28 = vld [vmem:[%s3269_s11 + $0x80] sm:$0xff]  ;;  %v2733_v33 = vld [vmem:[%s3310_s27 + $0x48] sm:$0xff]  ;;  %v676_v35 = vld [vmem:[%s3269_s11 + $0x98] sm:$0xff] }
  0x28   : > { %689 = vperm.xlu0 %2990, %v658_v5   ;;  %699 = vperm.xlu1 %2991, %v660_v8   ;;  %v674_v36 = vld [vmem:[%s3269_s11 + $0x88] sm:$0xff]  ;;  %v414_v38 = vld [vmem:[%s3310_s27 + $0x60] sm:$0xf]  ;;  %v679_v39 = vld [vmem:[%s3269_s11 + $0xb0] sm:$0xff] }
  0x29   : > { %2902 = vmatpush.bf16.msra.mxu3 %v2740_v9  ;;  %709 = vperm.xlu2 %2992, %v662_v14   ;;  %v678_v37 = vld [vmem:[%s3269_s11 + $0xa8] sm:$0xff]  ;;  %v677_v40 = vld [vmem:[%s3269_s11 + $0xa0] sm:$0xff]  ;;  %v484_v41 = vunpack.c.l.b16 %v414_v38  ;;  %v2726_v43 = vld [vmem:[%s3310_s27 + $0x10] sm:$0xff] }
  0x2a   : > { %563 = vmatpush.bf16.msra.mxu0 %v2739_v11  ;;  %v681_v42 = vld [vmem:[%s3269_s11 + $0xc0] sm:$0xff]  ;;  %v2730_v44 = vld [vmem:[%s3310_s27 + $0x30] sm:$0xff]  ;;  %v680_v46 = vld [vmem:[%s3269_s11 + $0xb8] sm:$0xff] }
  0x2b   : > { %2903 = vmatpush.bf16.msra.mxu1 %v2739_v11  ;;  %2904 = vmatpush.bf16.msra.mxu2 %v2739_v11  ;;  %v497_v45 = vpack.c.b16 %v484_v41, %v484_v41  ;;  %v2727_v47 = vld [vmem:[%s3310_s27 + $0x18] sm:$0xff]  ;;  %v2627_v1 = vld [vmem:[#allocation3 + $0x140] sm:$0xf]  ;;  %v2667_v3 = vld [vmem:[#allocation3 + $0x188] sm:$0xf] }
  0x2c   : > { %v2731_v48 = vld [vmem:[%s3310_s27 + $0x38] sm:$0xff]  ;;  %v2800_v2 = vld [vmem:[#allocation3 + $0x15c] sm:$0xf0]  ;;  %v2809_v5 = vld [vmem:[#allocation3 + $0x1a4] sm:$0xf0]  ;;  %s3088_s27 = sshra.s32 %s2190_s24, 4  ;;  %s3089_s27 = int_to_ptr.hbm [resolvable:$true] %s3088_s27 }
  0x2d   : > { %2905 = vmatpush.bf16.msra.mxu3 %v2739_v11  ;;  %v2628_v4 = vor.u32 %v2800_v2, %v2627_v1  ;;  %v2797_v6 = vld [vmem:[#allocation3 + $0x14c] sm:$0xf]  ;;  %v2668_v8 = vor.u32 %v2809_v5, %v2667_v3  ;;  %v2595_v14 = vld [vmem:[#allocation3 + $0x100] sm:$0xf]  ;;  %v2780_v49 = vld [vmem:[#allocation3 + $0xc4] sm:$0xf]  ;;  %p3095_p5 = scmp.lt.s32.totalorder %s3089_s27, %s3934_s6 }
  0x2e   : > { %564 = vmatpush.bf16.msra.mxu0 %v2738_v13  ;;  %v2637_v7 = vld [vmem:[#allocation3 + $0x168] sm:$0xf0]  ;;  %v2784_v38 = vld [vmem:[#allocation3 + $0xdc] sm:$0xf0]  ;;  %v2539_v56 = vld [vmem:[#allocation3 + $0x88] sm:$0xf] }
  0x2f   : > { %2906 = vmatpush.bf16.msra.mxu1 %v2738_v13  ;;  %2907 = vmatpush.bf16.msra.mxu2 %v2738_v13  ;;  %v2640_v9 = vor.u32 %v2797_v6, %v2637_v7  ;;  %v2573_v41 = vld [vmem:[#allocation3 + $0xe8] sm:$0xf0]  ;;  %v2776_v55 = vld [vmem:[#allocation3 + $0x9c] sm:$0xf0]  ;;  %v2772_v1 = vld [vmem:[#allocation3 + $0x84] sm:$0xf] }
  0x30   : > { %714 = vperm.xlu0 %2990, %v663_v10   ;;  %719 = vperm.xlu1 %2991, %v664_v12   ;;  %v2635_v12 = vld [vmem:[#allocation3 + $0x148] sm:$0xf]  ;;  %v2773_v59 = vld [vmem:[#allocation3 + $0x8c] sm:$0xf]  ;;  %v2533_v2 = vld [vmem:[#allocation3 + $0xa0] sm:$0xf0] }
  0x31   : > { %2908 = vmatpush.bf16.msra.mxu3 %v2738_v13  ;;  %724 = vperm.xlu2 %2992, %v665_v18   ;;  %v2801_v13 = vld [vmem:[#allocation3 + $0x164] sm:$0xf0]  ;;  %v2605_v18 = vld [vmem:[#allocation3 + $0x128] sm:$0xf0]  ;;  %v2536_v3 = vor.u32 %v2772_v1, %v2533_v2  ;;  %v2499_v7 = vld [vmem:[#allocation3 + $0x40] sm:$0xf] }
  0x32   : > { %565 = vmatpush.bf16.msra.mxu0 %v2737_v16  ;;  %v2541_v60 = vld [vmem:[#allocation3 + $0xa8] sm:$0xf0]  ;;  %v2507_v5 = vld [vmem:[#allocation3 + $0x48] sm:$0xf]  ;;  %s3090_s11 = scalar_lea.hbm %s3089_s27, 800 }
  0x33   : > { %2909 = vmatpush.bf16.msra.mxu1 %v2737_v16  ;;  %2910 = vmatpush.bf16.msra.mxu2 %v2737_v16  ;;  %v2769_v6 = vld [vmem:[#allocation3 + $0x64] sm:$0xf0]  ;;  %p3091_p1 = scmp.ne.s32.totalorder %s3089_s27, %s3090_s11 }
  0x35   : > { %2911 = vmatpush.bf16.msra.mxu3 %v2737_v16  ;;  %v2792_v16 = vld [vmem:[#allocation3 + $0x11c] sm:$0xf0]  ;;  %p3092_p2 = pnand %p3091_p1, %p3239_p4 }
  0x36   : > { %566 = vmatpush.bf16.msra.mxu0 %v2736_v19 }
  0x37   : > { %2912 = vmatpush.bf16.msra.mxu1 %v2736_v19  ;;  %2913 = vmatpush.bf16.msra.mxu2 %v2736_v19  ;;  %p3093_p3 = pneg %p3092_p2 }
  0x38   : > { %729 = vperm.xlu0 %2990, %v666_v15   ;;  %734 = vperm.xlu1 %2991, %v667_v17   ;;  %v2636_v15 = vor.u32 %v2801_v13, %v2635_v12  ;;  %v2789_v17 = vld [vmem:[#allocation3 + $0x10c] sm:$0xf] }
  0x39   : > { %2914 = vmatpush.bf16.msra.mxu3 %v2736_v19  ;;  %567 = vmatmul.bf16.vlgmr.msra.gmra.mxu0 %v2724_v21  ;;  %v2596_v19 = vor.u32 %v2792_v16, %v2595_v14  ;;  %v2812_v21 = vld [vmem:[#allocation3 + $0x1c4] sm:$0xf]  ;;  %v2765_v12 = vld [vmem:[#allocation3 + $0x4c] sm:$0xf] }
  0x3a   : > { %587 = vmatmul.bf16.vlgmr.msra.gmra.mxu1 %v2728_v22  ;;  %607 = vmatmul.bf16.vlgmr.msra.gmra.mxu2 %v2732_v23  ;;  %v2693_v22 = vld [vmem:[#allocation3 + $0x1e0] sm:$0xf0]  ;;  %v2509_v13 = vld [vmem:[#allocation3 + $0x68] sm:$0xf0] }
  0x3b   : > { %739 = vperm.xlu2 %2992, %v668_v26   ;;  %1385 = vmatpush.bf16.msrb.mxu1 %v2692_v52  ;;  %v2696_v23 = vor.u32 %v2812_v21, %v2693_v22  ;;  %v2661_v26 = vld [vmem:[#allocation3 + $0x1a0] sm:$0xf0]  ;;  %v2761_v21 = vld [vmem:[#allocation3 + $0x24] sm:$0xf0] }
  0x3c   : > { %617 = vmatmul.bf16.vlgmr.msra.gmra.mxu3 %v2734_v24  ;;  %1604 = vmatpush.bf16.msrb.mxu0 %v2704_v54  ;;  %v2565_v52 = vld [vmem:[#allocation3 + $0xe0] sm:$0xf0]  ;;  %v2531_v54 = vld [vmem:[#allocation3 + $0x80] sm:$0xf] }
  0x3d   : > { %1531 = vmatpush.bf16.msrb.mxu3 %v2700_v63  ;;  %1458 = vmatpush.bf16.msrb.mxu2 %v2696_v23  ;;  %v2568_v53 = vor.u32 %v2780_v49, %v2565_v52  ;;  %v2532_v57 = vor.u32 %v2776_v55, %v2531_v54  ;;  %v2544_v63 = vor.u32 %v2773_v59, %v2541_v60  ;;  %v2764_v16 = vld [vmem:[#allocation3 + $0x44] sm:$0xf] }
  0x3e   : > { %v2756_v22 = vld [vmem:[#allocation3 + $0x4] sm:$0xf] }
  0x3f   : > { %1386 = vmatpush.bf16.msrb.mxu1 %v2660_v58  ;;  %v2777_v58 = vld [vmem:[#allocation3 + $0xa4] sm:$0xf0] }
  0x40   : > { %744 = vperm.xlu0 %2990, %v669_v20   ;;  %749 = vperm.xlu1 %2991, %v670_v25   ;;  %v2608_v20 = vor.u32 %v2789_v17, %v2605_v18  ;;  %v2804_v25 = vld [vmem:[#allocation3 + $0x184] sm:$0xf] }
  0x41   : > { %1605 = vmatpush.bf16.msrb.mxu0 %v2672_v62  ;;  %1532 = vmatpush.bf16.msrb.mxu3 %v2668_v8  ;;  %v2540_v62 = vor.u32 %v2777_v58, %v2539_v56  ;;  %v2508_v8 = vor.u32 %v2769_v6, %v2507_v5  ;;  %v2501_v17 = vld [vmem:[#allocation3 + $0x60] sm:$0xf0]  ;;  %v2814_v56 = vld [vmem:[#allocation3 + $0x1d4] sm:$0xf]  ;;  %v2715_v58 = vld [vmem:[#allocation3 + $0x1d8] sm:$0xf] }
  0x43   : > { %754 = vperm.xlu2 %2992, %v671_v29   ;;  %1387 = vmatpush.bf16.msrb.mxu1 %v2628_v4 }
  0x45   : > { %1606 = vmatpush.bf16.msrb.mxu0 %v2640_v9  ;;  %1533 = vmatpush.bf16.msrb.mxu3 %v2636_v15  ;;  %v2768_v9 = vld [vmem:[#allocation3 + $0x5c] sm:$0xf0]  ;;  %v2512_v15 = vor.u32 %v2765_v12, %v2509_v13 }
  0x46   : > { %v2500_v14 = vor.u32 %v2768_v9, %v2499_v7 }
  0x47   : > { %1388 = vmatpush.bf16.msrb.mxu1 %v2596_v19  ;;  %v2504_v19 = vor.u32 %v2764_v16, %v2501_v17 }
  0x48   : > { %759 = vperm.xlu0 %2990, %v672_v27   ;;  %764 = vperm.xlu1 %2991, %v673_v28   ;;  %v2664_v28 = vor.u32 %v2804_v25, %v2661_v26  ;;  %v2469_v25 = vld [vmem:[#allocation3 + $0x20] sm:$0xf0]  ;;  %v2467_v26 = vld [vmem:[#allocation3] sm:$0xf] }
  0x49   : > { %572 = vmatmul.bf16.gmra.mxu0 %v2725_v31  ;;  %v2629_v31 = vld [vmem:[#allocation3 + $0x160] sm:$0xf0] }
  0x4a   : > { %592 = vmatmul.bf16.gmra.mxu1 %v2729_v32  ;;  %612 = vmatmul.bf16.gmra.mxu2 %v2733_v33  ;;  %v2603_v33 = vld [vmem:[#allocation3 + $0x108] sm:$0xf] }
  0x4b   : > { %769 = vperm.xlu2 %2992, %v674_v36   ;;  %1607 = vmatpush.bf16.msrb.mxu0 %v2608_v20  ;;  %v2475_v20 = vld [vmem:[#allocation3 + $0x8] sm:$0xf] }
  0x4c   : > { %622 = vmatmul.bf16.gmra.mxu3 %v2735_v34  ;;  %1459 = vmatpush.bf16.msrb.mxu2 %v2664_v28  ;;  %v2793_v34 = vld [vmem:[#allocation3 + $0x124] sm:$0xf0]  ;;  %v2476_v23 = vor.u32 %v2761_v21, %v2475_v20  ;;  %v2760_v28 = vld [vmem:[#allocation3 + $0x1c] sm:$0xf0] }
  0x4d   : > { %v2604_v36 = vor.u32 %v2793_v34, %v2603_v33  ;;  %v2477_v33 = vld [vmem:[#allocation3 + $0x28] sm:$0xf0] }
  0x4f   : > { %1534 = vmatpush.bf16.msrb.mxu3 %v2604_v36 }
  0x50   : > { %774 = vperm.xlu0 %2990, %v675_v30   ;;  %779 = vperm.xlu1 %2991, %v676_v35   ;;  %v2796_v30 = vld [vmem:[#allocation3 + $0x144] sm:$0xf] }
  0x51   : > { %v2632_v32 = vor.u32 %v2796_v30, %v2629_v31  ;;  %v2472_v30 = vor.u32 %v2756_v22, %v2469_v25  ;;  %v2468_v31 = vor.u32 %v2760_v28, %v2467_v26  ;;  %v2707_v25 = vld [vmem:[#allocation3 + $0x1d0] sm:$0xf]  ;;  %v2815_v28 = vld [vmem:[#allocation3 + $0x1dc] sm:$0xf] }
  0x52   : > { %v2818_v26 = vld [vmem:[#allocation3 + $0x1ec] sm:$0xf0] }
  0x53   : > { %784 = vperm.xlu2 %2992, %v677_v40   ;;  %1460 = vmatpush.bf16.msrb.mxu2 %v2632_v32  ;;  %v2757_v32 = vld [vmem:[#allocation3 + $0xc] sm:$0xf] }
  0x54   : > { %v2480_v34 = vor.u32 %v2757_v32, %v2477_v33  ;;  %v2717_v32 = vld [vmem:[#allocation3 + $0x1f8] sm:$0xf0] }
  0x58   : > { %789 = vperm.xlu0 %2990, %v678_v37   ;;  %794 = vperm.xlu1 %2991, %v679_v39   ;;  %v2563_v37 = vld [vmem:[#allocation3 + $0xc0] sm:$0xf]  ;;  %v2781_v39 = vld [vmem:[#allocation3 + $0xcc] sm:$0xf] }
  0x59   : > { %577 = vmatmul.bf16.gmra.mxu0 %v2726_v43  ;;  %v2564_v40 = vor.u32 %v2784_v38, %v2563_v37  ;;  %v2597_v43 = vld [vmem:[#allocation3 + $0x120] sm:$0xf0] }
  0x5a   : > { %597 = vmatmul.bf16.gmra.mxu1 %v2730_v44 }
  0x5b   : > { %799 = vperm.xlu2 %2992, %v680_v46   ;;  %1389 = vmatpush.bf16.msrb.mxu1 %v2564_v40  ;;  %v3372_v40 = vld [vmem:[%s367_s28] ss:$0 sm:$0xff]  ;;  %s3094_s28 = scalar_lea.hbm %s3934_s6, 1600 }
  0x5c   : > { %627 = vmatmul.bf16.gmra.mxu3 %v497_v45  ;;  %v2576_v45 = vor.u32 %v2781_v39, %v2573_v41  ;;  %p3096_p6 = scmp.lt.s32.totalorder %s3094_s28, %s3090_s11 }
  0x5e   : > { %1608 = vmatpush.bf16.msrb.mxu0 %v2576_v45  ;;  %p3097_p7 = por %p3096_p6, %p3095_p5 }
  0x5f   : > { %1390 = vmatpush.bf16.msrb.mxu1 %v2532_v57  ;;  %v2709_v57 = vld [vmem:[#allocation3 + $0x1f0] sm:$0xf0] }
  0x60   : > { %804 = vperm.xlu0 %2990, %v681_v42   ;;  %v2788_v42 = vld [vmem:[#allocation3 + $0x104] sm:$0xf]  ;;  %v2712_v60 = vor.u32 %v2814_v56, %v2709_v57  ;;  %p3098_p9 = pnand %p3097_p7, %p3093_p3 }
  0x61   : > { %v2600_v46 = vor.u32 %v2788_v42, %v2597_v43 }
  0x62   : > { %1609 = vmatpush.bf16.msrb.mxu0 %v2544_v63 }
  0x63   : > { %1461 = vmatpush.bf16.msrb.mxu2 %v2600_v46  ;;  %1391 = vmatpush.bf16.msrb.mxu1 %v2500_v14 }
  0x66   : > { %1610 = vmatpush.bf16.msrb.mxu0 %v2512_v15 }
  0x67   : > { %1462 = vmatpush.bf16.msrb.mxu2 %v2568_v53  ;;  %1392 = vmatpush.bf16.msrb.mxu1 %v2468_v31  ;;  %v2708_v31 = vor.u32 %v2818_v26, %v2707_v25  ;;  %v2677_v25 = vld [vmem:[#allocation3 + $0x1b0] sm:$0xf0] }
  0x69   : > { %582 = vmatmul.bf16.gmra.mxu0 %v2727_v47  ;;  %v2571_v47 = vld [vmem:[#allocation3 + $0xc8] sm:$0xf] }
  0x6a   : > { %602 = vmatmul.bf16.gmra.mxu1 %v2731_v48  ;;  %v2785_v48 = vld [vmem:[#allocation3 + $0xe4] sm:$0xf0]  ;;  %1611 = vmatpush.bf16.msrb.mxu0 %v2480_v34 }
  0x6b   : > { %v2572_v51 = vor.u32 %v2785_v48, %v2571_v47  ;;  %1463 = vmatpush.bf16.msrb.mxu2 %v2536_v3  ;;  %1677 = vmatpush.bf16.msra.mxu1 %v2708_v31  ;;  %v2811_v31 = vld [vmem:[#allocation3 + $0x1b4] sm:$0xf0] }
  0x6d   : > { %1535 = vmatpush.bf16.msrb.mxu3 %v2572_v51 }
  0x6f   : > { %1464 = vmatpush.bf16.msrb.mxu2 %v2504_v19 }
  0x71   : > { %1536 = vmatpush.bf16.msrb.mxu3 %v2540_v62  ;;  %v2819_v62 = vld [vmem:[#allocation3 + $0x1f4] sm:$0xf0] }
  0x72   : > { %v2716_v3 = vor.u32 %v2819_v62, %v2715_v58 }
  0x73   : > { %1465 = vmatpush.bf16.msrb.mxu2 %v2472_v30 }
  0x75   : > { %1537 = vmatpush.bf16.msrb.mxu3 %v2508_v8 }
  0x77   : > { %1750 = vmatpush.bf16.msra.mxu2 %v2712_v60 }
  0x79   : > { %1538 = vmatpush.bf16.msrb.mxu3 %v2476_v23 }
  0x7b   : > { %v3341_v10 = vpop.permute.xlu2 %704 }
  0x7d   : > { %1823 = vmatpush.bf16.msra.mxu3 %v2716_v3 }
  0x83   : > { %v3347_v27 = vpop.permute.xlu2 %709 }
  0x8b   : > { %v3353_v44 = vpop.permute.xlu2 %724 }
  0x92   : > { %v3339_v0 = vpop.permute.xlu0 %684  ;;  %v3345_v24 = vpop.permute.xlu1 %694 }
  0x95   : > { %v3359_v4 = vpop.permute.xlu2 %739 }
  0x9a   : > { %v3343_v11 = vpop.permute.xlu0 %689  ;;  %v3351_v35 = vpop.permute.xlu1 %699 }
  0x9d   : > { %v3365_v39 = vpop.permute.xlu2 %754 }
  0xa2   : > { %v3349_v29 = vpop.permute.xlu0 %714  ;;  %v3357_v61 = vpop.permute.xlu1 %719 }
  0xa5   : > { %v770_v55 = vpop.permute.xlu2 %769 }
  0xaa   : > { %v3355_v50 = vpop.permute.xlu0 %729  ;;  %v3363_v36 = vpop.permute.xlu1 %734 }
  0xad   : > { %v785_v23 = vpop.permute.xlu2 %784 }
  0xb2   : > { %v3361_v18 = vpop.permute.xlu0 %744  ;;  %v3380_v52 = vpop.permute.xlu1 %749 }
  0xb6   : > { %v568_v37 = vpop.f32.mrf.mxu0 }
  0xb7   : > { %v588_v38 = vpop.f32.mrf.mxu1  ;;  %v569_v43 = vadd.f32 %v3372_v40, %v568_v37  ;;  %v2720_v37 = vor.u32 %v2815_v28, %v2717_v32 }
  0xb8   : > { %v589_v42 = vadd.f32 %v3372_v40, %v588_v38 }
  0xb9   : > { %1896 = vmatpush.bf16.msra.mxu0 %v2720_v37 }
  0xba   : > { %v3374_v41 = vpop.permute.xlu0 %759  ;;  %2994 = vtanh.f32 %v589_v42  ;;  %v765_v20 = vpop.permute.xlu1 %764 }
  0xbb   : > { %2996 = vtanh.f32 %v569_v43 }
  0xbd   : > { %v608_v45 = vpop.f32.mrf.mxu2 }
  0xbe   : > { %v570_v47 = vpop.f32.mrf.mxu0  ;;  %v609_v53 = vadd.f32 %v3372_v40, %v608_v45 }
  0xbf   : > { %v618_v46 = vpop.f32.mrf.mxu3  ;;  %v590_v48 = vpop.f32.mrf.mxu1  ;;  %v571_v49 = vadd.f32 %v3372_v40, %v570_v47 }
  0xc0   : > { %v591_v51 = vadd.f32 %v3372_v40, %v590_v48  ;;  %v619_v54 = vadd.f32 %v3372_v40, %v618_v46  ;;  %v2995_v63 = vpop.eup %2994 }
  0xc1   : > { %2998 = vtanh.f32 %v571_v49  ;;  %v2997_v5 = vpop.eup %2996  ;;  %v815_v13 = vmul.f32 %v2995_v63, %v3353_v44 }
  0xc2   : > { %3000 = vtanh.f32 %v591_v51  ;;  %v3384_v59 = vpop.permute.xlu0 %774  ;;  %v807_v15 = vmul.f32 %v2997_v5, %v3339_v0  ;;  %v780_v58 = vpop.permute.xlu1 %779 }
  0xc3   : > { %3002 = vtanh.f32 %v609_v53 }
  0xc4   : > { %3004 = vtanh.f32 %v619_v54 }
  0xc5   : > { %v610_v1 = vpop.f32.mrf.mxu2 }
  0xc6   : > { %v611_v6 = vadd.f32 %v3372_v40, %v610_v1  ;;  %v573_v8 = vpop.f32.mrf.mxu0 }
  0xc7   : > { %v620_v2 = vpop.f32.mrf.mxu3  ;;  %v593_v9 = vpop.f32.mrf.mxu1  ;;  %v574_v44 = vadd.f32 %v3372_v40, %v573_v8 }
  0xc8   : > { %v621_v7 = vadd.f32 %v3372_v40, %v620_v2  ;;  %v2999_v12 = vpop.eup %2998  ;;  %3006 = vtanh.f32 %v611_v6 }
  0xc9   : > { %v3001_v14 = vpop.eup %3000  ;;  %v808_v16 = vmul.f32 %v2999_v12, %v3343_v11  ;;  %v594_v11 = vadd.f32 %v3372_v40, %v593_v9 }
  0xca   : > { %3008 = vtanh.f32 %v621_v7  ;;  %v3003_v17 = vpop.eup %3002  ;;  %v816_v19 = vmul.f32 %v3001_v14, %v3355_v50  ;;  %v790_v46 = vpop.permute.xlu0 %789 }
  0xcb   : > { %v3005_v21 = vpop.eup %3004  ;;  %v2823_v22 = vpack.c.bf16 %v808_v16, %v807_v15  ;;  %v823_v0 = vmul.f32 %v3003_v17, %v765_v20  ;;  %3010 = vtanh.f32 %v574_v44  ;;  %v2683_v44 = vld [vmem:[#allocation3 + $0x198] sm:$0xf] }
  0xcc   : > { %v2843_v30 = vpack.c.bf16 %v816_v19, %v815_v13  ;;  %v827_v38 = vmul.f32 %v3005_v21, %v785_v23  ;;  %3012 = vtanh.f32 %v594_v11  ;;  %v800_v23 = vpop.permute.xlu2 %799  ;;  %v2684_v37 = vor.u32 %v2811_v31, %v2683_v44  ;;  %v2790_v44 = vld [vmem:[#allocation3 + $0x114] sm:$0xf] }
  0xcd   : > { %2824 = vst [vmem:[#allocation2] sm:$0xff] %v2823_v22   ;;  %v613_v33 = vpop.f32.mrf.mxu2  ;;  %v2613_v31 = vld [vmem:[#allocation3 + $0x130] sm:$0xf0] }
  0xce   : > { %v3007_v50 = vpop.eup %3006  ;;  %2883 = vst [vmem:[#allocation2 + $0x20] sm:$0xff] %v2843_v30   ;;  %v575_v42 = vpop.f32.mrf.mxu0  ;;  %v614_v54 = vadd.f32 %v3372_v40, %v613_v33  ;;  %1824 = vmatpush.bf16.msra.mxu3 %v2684_v37 }
  0xcf   : > { %v623_v34 = vpop.f32.mrf.mxu3  ;;  %v595_v43 = vpop.f32.mrf.mxu1  ;;  %v824_v47 = vmul.f32 %v3007_v50, %v770_v55  ;;  %v576_v48 = vadd.f32 %v3372_v40, %v575_v42  ;;  %v2675_v50 = vld [vmem:[#allocation3 + $0x190] sm:$0xf] }
  0xd0   : > { %v3009_v45 = vpop.eup %3008  ;;  %v596_v49 = vadd.f32 %v3372_v40, %v595_v43  ;;  %v624_v57 = vadd.f32 %v3372_v40, %v623_v34 }
  0xd1   : > { %v828_v51 = vmul.f32 %v3009_v45, %v790_v46  ;;  %v2863_v53 = vpack.c.bf16 %v824_v47, %v823_v0  ;;  %3014 = vtanh.f32 %v576_v48  ;;  %v3011_v63 = vpop.eup %3010  ;;  %v795_v0 = vpop.permute.xlu1 %794  ;;  %v2685_v46 = vld [vmem:[#allocation3 + $0x1b8] sm:$0xf0] }
  0xd2   : > { %3016 = vtanh.f32 %v596_v49  ;;  %v3013_v6 = vpop.eup %3012  ;;  %v809_v9 = vmul.f32 %v3011_v63, %v3345_v24  ;;  %v2806_v24 = vld [vmem:[#allocation3 + $0x194] sm:$0xf] }
  0xd3   : > { %v2873_v56 = vpack.c.bf16 %v828_v51, %v827_v38  ;;  %2887 = vst [vmem:[#allocation2 + $0x40] sm:$0xff] %v2863_v53   ;;  %3018 = vtanh.f32 %v614_v54  ;;  %v817_v14 = vmul.f32 %v3013_v6, %v3363_v36  ;;  %v2680_v30 = vor.u32 %v2806_v24, %v2677_v25  ;;  %v2810_v38 = vld [vmem:[#allocation3 + $0x1ac] sm:$0xf0] }
  0xd4   : > { %v3398_v55 = vld [vmem:[#allocation2] sm:$0xff]  ;;  %3020 = vtanh.f32 %v624_v57  ;;  %v2676_v45 = vor.u32 %v2810_v38, %v2675_v50 }
  0xd5   : > { %2889 = vst [vmem:[#allocation2 + $0x50] sm:$0xff] %v2873_v56   ;;  %v615_v60 = vpop.f32.mrf.mxu2  ;;  %1393 = vmatmul.bf16.vlgmr.msrb.gmra.mxu1 %v3398_v55  ;;  %1466 = vmatmul.bf16.vlgmr.msrb.gmra.mxu2 %v3398_v55  ;;  %v805_v56 = vpop.permute.xlu0 %804 }
  0xd6   : > { %v616_v1 = vadd.f32 %v3372_v40, %v615_v60  ;;  %v578_v3 = vpop.f32.mrf.mxu0  ;;  %1539 = vmatmul.bf16.vlgmr.msrb.gmra.mxu3 %v3398_v55  ;;  %1612 = vmatmul.bf16.vlgmr.msrb.gmra.mxu0 %v3398_v55 }
  0xd7   : > { %v625_v62 = vpop.f32.mrf.mxu3  ;;  %v598_v5 = vpop.f32.mrf.mxu1  ;;  %v579_v13 = vadd.f32 %v3372_v40, %v578_v3  ;;  %1751 = vmatpush.bf16.msra.mxu2 %v2680_v30  ;;  %1678 = vmatpush.bf16.msra.mxu1 %v2676_v45  ;;  %v2645_v3 = vld [vmem:[#allocation3 + $0x170] sm:$0xf0]  ;;  %v2621_v45 = vld [vmem:[#allocation3 + $0x138] sm:$0xf0] }
  0xd8   : > { %v626_v2 = vadd.f32 %v3372_v40, %v625_v62  ;;  %v3015_v7 = vpop.eup %3014  ;;  %3022 = vtanh.f32 %v616_v1  ;;  %v599_v16 = vadd.f32 %v3372_v40, %v598_v5  ;;  %v2651_v5 = vld [vmem:[#allocation3 + $0x158] sm:$0xf] }
  0xd9   : > { %v3017_v8 = vpop.eup %3016  ;;  %v810_v12 = vmul.f32 %v3015_v7, %v3351_v35 }
  0xda   : > { %3024 = vtanh.f32 %v626_v2  ;;  %v818_v15 = vmul.f32 %v3017_v8, %v3359_v4  ;;  %v3019_v17 = vpop.eup %3018  ;;  %v2798_v2 = vld [vmem:[#allocation3 + $0x154] sm:$0xf] }
  0xdb   : > { %v2828_v19 = vpack.c.bf16 %v810_v12, %v809_v9  ;;  %v3021_v21 = vpop.eup %3020  ;;  %3026 = vtanh.f32 %v579_v13  ;;  %v825_v26 = vmul.f32 %v3019_v17, %v3384_v59  ;;  %v2807_v59 = vld [vmem:[#allocation3 + $0x19c] sm:$0xf]  ;;  %v2648_v9 = vor.u32 %v2798_v2, %v2645_v3  ;;  %v2803_v12 = vld [vmem:[#allocation3 + $0x174] sm:$0xf0]  ;;  %v2643_v13 = vld [vmem:[#allocation3 + $0x150] sm:$0xf] }
  0xdc   : > { %v2848_v20 = vpack.c.bf16 %v818_v15, %v817_v14  ;;  %3028 = vtanh.f32 %v599_v16  ;;  %v829_v42 = vmul.f32 %v3021_v21, %v795_v0  ;;  %v2688_v48 = vor.u32 %v2807_v59, %v2685_v46  ;;  %v2802_v14 = vld [vmem:[#allocation3 + $0x16c] sm:$0xf0]  ;;  %v2653_v21 = vld [vmem:[#allocation3 + $0x178] sm:$0xf0] }
  0xdd   : > { %2880 = vst [vmem:[#allocation2 + $0x8] sm:$0xff] %v2828_v19   ;;  %v2652_v19 = vor.u32 %v2803_v12, %v2651_v5  ;;  %1752 = vmatpush.bf16.msra.mxu2 %v2648_v9  ;;  %v2779_v12 = vld [vmem:[#allocation3 + $0xb4] sm:$0xf0] }
  0xde   : > { %v3023_v35 = vpop.eup %3022  ;;  %2884 = vst [vmem:[#allocation2 + $0x28] sm:$0xff] %v2848_v20   ;;  %v580_v4 = vpop.f32.mrf.mxu0  ;;  %1897 = vmatpush.bf16.msra.mxu0 %v2688_v48  ;;  %v2799_v20 = vld [vmem:[#allocation3 + $0x15c] sm:$0xf]  ;;  %v2782_v48 = vld [vmem:[#allocation3 + $0xd4] sm:$0xf] }
  0xdf   : > { %v628_v22 = vpop.f32.mrf.mxu3  ;;  %v600_v28 = vpop.f32.mrf.mxu1  ;;  %v826_v11 = vmul.f32 %v3023_v35, %v780_v58  ;;  %v581_v33 = vadd.f32 %v3372_v40, %v580_v4  ;;  %v2656_v24 = vor.u32 %v2799_v20, %v2653_v21  ;;  %1825 = vmatpush.bf16.msra.mxu3 %v2652_v19  ;;  %v2557_v19 = vld [vmem:[#allocation3 + $0xb8] sm:$0xf0] }
  0xe0   : > { %v629_v36 = vadd.f32 %v3372_v40, %v628_v22  ;;  %v3025_v32 = vpop.eup %3024  ;;  %v601_v34 = vadd.f32 %v3372_v40, %v600_v28 }
  0xe1   : > { %v830_v43 = vmul.f32 %v3025_v32, %v800_v23  ;;  %v2868_v47 = vpack.c.bf16 %v826_v11, %v825_v26  ;;  %v3027_v51 = vpop.eup %3026  ;;  %v2644_v23 = vor.u32 %v2802_v14, %v2643_v13  ;;  %v2619_v32 = vld [vmem:[#allocation3 + $0x118] sm:$0xf]  ;;  %v2547_v14 = vld [vmem:[#allocation3 + $0x90] sm:$0xf] }
  0xe2   : > { %3030 = vtanh.f32 %v629_v36  ;;  %v3029_v53 = vpop.eup %3028  ;;  %v811_v7 = vmul.f32 %v3027_v51, %v3341_v10  ;;  %1898 = vmatpush.bf16.msra.mxu0 %v2656_v24  ;;  %v2587_v51 = vld [vmem:[#allocation3 + $0xd8] sm:$0xf] }
  0xe3   : > { %3032 = vtanh.f32 %v581_v33  ;;  %v2878_v49 = vpack.c.bf16 %v830_v43, %v829_v42  ;;  %2888 = vst [vmem:[#allocation2 + $0x48] sm:$0xff] %v2868_v47   ;;  %v819_v15 = vmul.f32 %v3029_v53, %v3361_v18  ;;  %1679 = vmatpush.bf16.msra.mxu1 %v2644_v23  ;;  %v2616_v33 = vor.u32 %v2790_v44, %v2613_v31  ;;  %v3446_v47 = vld [vmem:[#allocation2 + $0x20] sm:$0xff]  ;;  %v2515_v44 = vld [vmem:[#allocation3 + $0x50] sm:$0xf] }
  0xe4   : > { %3034 = vtanh.f32 %v601_v34  ;;  %v3416_v54 = vld [vmem:[#allocation2 + $0x8] sm:$0xff]  ;;  %v2795_v34 = vld [vmem:[#allocation3 + $0x134] sm:$0xf0]  ;;  %v2770_v31 = vld [vmem:[#allocation3 + $0x6c] sm:$0xf0] }
  0xe5   : > { %2890 = vst [vmem:[#allocation2 + $0x58] sm:$0xff] %v2878_v49   ;;  %1398 = vmatmul.bf16.gmra.mxu1 %v3416_v54  ;;  %1471 = vmatmul.bf16.gmra.mxu2 %v3416_v54  ;;  %v2620_v38 = vor.u32 %v2795_v34, %v2619_v32  ;;  %v2581_v49 = vld [vmem:[#allocation3 + $0xf0] sm:$0xf0]  ;;  %v3452_v3 = vld [vmem:[#allocation2 + $0x28] sm:$0xff] }
  0xe6   : > { %v583_v60 = vpop.f32.mrf.mxu0  ;;  %1544 = vmatmul.bf16.gmra.mxu3 %v3416_v54  ;;  %1617 = vmatmul.bf16.gmra.mxu0 %v3416_v54  ;;  %v2584_v53 = vor.u32 %v2782_v48, %v2581_v49 }
  0xe7   : > { %v630_v57 = vpop.f32.mrf.mxu3  ;;  %v603_v62 = vpop.f32.mrf.mxu1  ;;  %1753 = vmatpush.bf16.msra.mxu2 %v2616_v33  ;;  %1826 = vmatpush.bf16.msra.mxu3 %v2620_v38  ;;  %v2525_v33 = vld [vmem:[#allocation3 + $0x78] sm:$0xf0] }
  0xe8   : > { %v3031_v58 = vpop.eup %3030  ;;  %v604_v25 = vadd.f32 %v3372_v40, %v603_v62  ;;  %v2579_v57 = vld [vmem:[#allocation3 + $0xd0] sm:$0xf] }
  0xe9   : > { %v3033_v63 = vpop.eup %3032  ;;  %v831_v1 = vmul.f32 %v3031_v58, %v805_v56  ;;  %v2787_v56 = vld [vmem:[#allocation3 + $0xf4] sm:$0xf0]  ;;  %v2786_v58 = vld [vmem:[#allocation3 + $0xec] sm:$0xf0] }
  0xea   : > { %v3035_v6 = vpop.eup %3034  ;;  %v812_v8 = vmul.f32 %v3033_v63, %v3347_v27  ;;  %v584_v27 = vadd.f32 %v3372_v40, %v583_v60  ;;  %v2588_v60 = vor.u32 %v2787_v56, %v2587_v51  ;;  %v2580_v62 = vor.u32 %v2786_v58, %v2579_v57  ;;  %v2783_v63 = vld [vmem:[#allocation3 + $0xdc] sm:$0xf] }
  0xeb   : > { %v856_v16 = vpack.c.bf16 %v831_v1, %v831_v1  ;;  %v820_v17 = vmul.f32 %v3035_v6, %v3380_v52  ;;  %v2589_v1 = vld [vmem:[#allocation3 + $0xf8] sm:$0xf0]  ;;  %1754 = vmatpush.bf16.msra.mxu2 %v2584_v53  ;;  %v2774_v6 = vld [vmem:[#allocation3 + $0x94] sm:$0xf] }
  0xec   : > { %v2833_v22 = vpack.c.bf16 %v812_v8, %v811_v7  ;;  %3036 = vtanh.f32 %v584_v27  ;;  %v2592_v2 = vor.u32 %v2783_v63, %v2589_v1  ;;  %1827 = vmatpush.bf16.msra.mxu3 %v2588_v60  ;;  %v2549_v7 = vld [vmem:[#allocation3 + $0xb0] sm:$0xf0]  ;;  %v2555_v8 = vld [vmem:[#allocation3 + $0x98] sm:$0xf]  ;;  %v3511_v60 = vld [vmem:[#allocation2 + $0x48] sm:$0xff] }
  0xed   : > { %881 = vst [vmem:[#allocation2 + $0x60] sm:$0xf] %v856_v16  ;;  %v2853_v10 = vpack.c.bf16 %v820_v17, %v819_v15  ;;  %3038 = vtanh.f32 %v604_v25  ;;  %v2552_v9 = vor.u32 %v2774_v6, %v2549_v7  ;;  %v2556_v13 = vor.u32 %v2779_v12, %v2555_v8  ;;  %v2778_v15 = vld [vmem:[#allocation3 + $0xac] sm:$0xf0]  ;;  %v2775_v16 = vld [vmem:[#allocation3 + $0x9c] sm:$0xf] }
  0xee   : > { %2881 = vst [vmem:[#allocation2 + $0x10] sm:$0xff] %v2833_v22   ;;  %v585_v18 = vpop.f32.mrf.mxu0  ;;  %v2548_v17 = vor.u32 %v2778_v15, %v2547_v14  ;;  %v2560_v20 = vor.u32 %v2775_v16, %v2557_v19  ;;  %v3473_v22 = vld [vmem:[%s3933_s5] sm:$0xff]  ;;  %v2758_v15 = vld [vmem:[#allocation3 + $0x14] sm:$0xf]  ;;  %v2491_v19 = vld [vmem:[#allocation3 + $0x18] sm:$0xf] }
  0xef   : > { %2885 = vst [vmem:[#allocation2 + $0x30] sm:$0xff] %v2853_v10   ;;  %v605_v52 = vpop.f32.mrf.mxu1  ;;  %v586_v35 = vadd.f32 %v3372_v40, %v585_v18  ;;  %1755 = vmatpush.bf16.msra.mxu2 %v2552_v9  ;;  %v3476_v10 = vld [vmem:[#allocation2 + $0x40] sm:$0xff]  ;;  %v3479_v27 = vperm.slane %v3473_v22, 0  ;;  %v3482_v25 = vperm.slane %v3473_v22, 3  ;;  %v3491_v18 = vperm.slane %v3473_v22, 1 }
  0xf0   : > { %v606_v26 = vadd.f32 %v3372_v40, %v605_v52  ;;  %1828 = vmatpush.bf16.msra.mxu3 %v2556_v13  ;;  %v3494_v52 = vperm.slane %v3473_v22, 2  ;;  %v2485_v16 = vld [vmem:[#allocation3 + $0x30] sm:$0xf0] }
  0xf1   : > { %3040 = vtanh.f32 %v586_v35  ;;  %v2766_v35 = vld [vmem:[#allocation3 + $0x54] sm:$0xf] }
  0xf2   : > { %3042 = vtanh.f32 %v606_v26  ;;  %v3037_v4 = vpop.eup %3036  ;;  %v2517_v26 = vld [vmem:[#allocation3 + $0x70] sm:$0xf0] }
  0xf3   : > { %v3039_v28 = vpop.eup %3038  ;;  %v813_v0 = vmul.f32 %v3037_v4, %v3349_v29  ;;  %v2611_v29 = vld [vmem:[#allocation3 + $0x110] sm:$0xf]  ;;  %v2523_v4 = vld [vmem:[#allocation3 + $0x58] sm:$0xf] }
  0xf4   : > { %v821_v37 = vmul.f32 %v3039_v28, %v3365_v39  ;;  %v2791_v39 = vld [vmem:[#allocation3 + $0x11c] sm:$0xf]  ;;  %v2520_v28 = vor.u32 %v2766_v35, %v2517_v26 }
  0xf5   : > { %v3430_v36 = vld [vmem:[#allocation2 + $0x10] sm:$0xff]  ;;  %v2624_v46 = vor.u32 %v2791_v39, %v2621_v45 }
  0xf6   : > { %1403 = vmatmul.bf16.gmra.mxu1 %v3430_v36  ;;  %1476 = vmatmul.bf16.gmra.mxu2 %v3430_v36  ;;  %v3458_v5 = vld [vmem:[#allocation2 + $0x30] sm:$0xff] }
  0xf7   : > { %v3041_v30 = vpop.eup %3040  ;;  %1549 = vmatmul.bf16.gmra.mxu3 %v3430_v36  ;;  %1622 = vmatmul.bf16.gmra.mxu0 %v3430_v36 }
  0xf8   : > { %v3043_v40 = vpop.eup %3042  ;;  %v814_v11 = vmul.f32 %v3041_v30, %v3357_v61  ;;  %v2794_v61 = vld [vmem:[#allocation3 + $0x12c] sm:$0xf0]  ;;  %1899 = vmatpush.bf16.msra.mxu0 %v2624_v46  ;;  %v2771_v30 = vld [vmem:[#allocation3 + $0x74] sm:$0xf0]  ;;  %1756 = vmatpush.bf16.msra.mxu2 %v2520_v28 }
  0xf9   : > { %v822_v50 = vmul.f32 %v3043_v40, %v3374_v41  ;;  %v2612_v41 = vor.u32 %v2794_v61, %v2611_v29  ;;  %v2524_v40 = vor.u32 %v2771_v30, %v2523_v4 }
  0xfa   : > { %v2838_v59 = vpack.c.bf16 %v814_v11, %v813_v0  ;;  %v2516_v0 = vor.u32 %v2770_v31, %v2515_v44  ;;  %v2767_v11 = vld [vmem:[#allocation3 + $0x5c] sm:$0xf] }
  0xfb   : > { %v2858_v42 = vpack.c.bf16 %v822_v50, %v821_v37  ;;  %1680 = vmatpush.bf16.msra.mxu1 %v2612_v41  ;;  %v2528_v38 = vor.u32 %v2767_v11, %v2525_v33  ;;  %1829 = vmatpush.bf16.msra.mxu3 %v2524_v40  ;;  %v3529_v40 = vld [vmem:[#allocation2 + $0x50] sm:$0xff] }
  0xfc   : > { %2882 = vst [vmem:[#allocation2 + $0x18] sm:$0xff] %v2838_v59   ;;  %1900 = vmatpush.bf16.msra.mxu0 %v2592_v2  ;;  %v2483_v11 = vld [vmem:[#allocation3 + $0x10] sm:$0xf] }
  0xfd   : > { %2886 = vst [vmem:[#allocation2 + $0x38] sm:$0xff] %v2858_v42   ;;  %v2762_v33 = vld [vmem:[#allocation3 + $0x2c] sm:$0xf0] }
  0xff   : > { %1681 = vmatpush.bf16.msra.mxu1 %v2580_v62 }
 0x100   : > { %1901 = vmatpush.bf16.msra.mxu0 %v2560_v20  ;;  %v2763_v20 = vld [vmem:[#allocation3 + $0x34] sm:$0xf0] }
 0x103   : > { %v3440_v43 = vld [vmem:[#allocation2 + $0x18] sm:$0xff]  ;;  %1682 = vmatpush.bf16.msra.mxu1 %v2548_v17  ;;  %v2488_v17 = vor.u32 %v2758_v15, %v2485_v16 }
 0x104   : > { %v3464_v21 = vld [vmem:[#allocation2 + $0x38] sm:$0xff]  ;;  %1902 = vmatpush.bf16.msra.mxu0 %v2528_v38 }
 0x105   : > { %1757 = vmatpush.bf16.msra.mxu2 %v2488_v17 }
 0x106   : > { %1408 = vmatmul.bf16.gmra.mxu1 %v3440_v43  ;;  %1481 = vmatmul.bf16.gmra.mxu2 %v3440_v43 }
 0x107   : > { %1554 = vmatmul.bf16.gmra.mxu3 %v3440_v43  ;;  %1627 = vmatmul.bf16.gmra.mxu0 %v3440_v43 }
 0x108   : > { %1683 = vmatpush.bf16.msra.mxu1 %v2516_v0 }
 0x116   : > { %1413 = vmatmul.bf16.gmra.mxu1 %v3446_v47  ;;  %1486 = vmatmul.bf16.gmra.mxu2 %v3446_v47 }
 0x117   : > { %1559 = vmatmul.bf16.gmra.mxu3 %v3446_v47  ;;  %1632 = vmatmul.bf16.gmra.mxu0 %v3446_v47 }
 0x126   : > { %1418 = vmatmul.bf16.gmra.mxu1 %v3452_v3  ;;  %1491 = vmatmul.bf16.gmra.mxu2 %v3452_v3 }
 0x127   : > { %1564 = vmatmul.bf16.gmra.mxu3 %v3452_v3  ;;  %1637 = vmatmul.bf16.gmra.mxu0 %v3452_v3 }
 0x136   : > { %1423 = vmatmul.bf16.gmra.mxu1 %v3458_v5  ;;  %1496 = vmatmul.bf16.gmra.mxu2 %v3458_v5 }
 0x137   : > { %1569 = vmatmul.bf16.gmra.mxu3 %v3458_v5  ;;  %1642 = vmatmul.bf16.gmra.mxu0 %v3458_v5 }
 0x146   : > { %1428 = vmatmul.bf16.gmra.mxu1 %v3464_v21  ;;  %1501 = vmatmul.bf16.gmra.mxu2 %v3464_v21 }
 0x147   : > { %1574 = vmatmul.bf16.gmra.mxu3 %v3464_v21  ;;  %1647 = vmatmul.bf16.gmra.mxu0 %v3464_v21 }
 0x152   : > { %v1394_v23 = vpop.f32.mrf.mxu1 }
 0x153   : > { %v1613_v24 = vpop.f32.mrf.mxu0  ;;  %v1395_v34 = vadd.f32 %v1394_v23, %v3479_v27 }
 0x154   : > { %v1614_v59 = vadd.f32 %v1613_v24, %v3482_v25  ;;  %v2492_v24 = vor.u32 %v2763_v20, %v2491_v19 }
 0x156   : > { %1433 = vmatmul.bf16.gmra.mxu1 %v3476_v10  ;;  %1506 = vmatmul.bf16.gmra.mxu2 %v3476_v10 }
 0x157   : > { %1579 = vmatmul.bf16.gmra.mxu3 %v3476_v10  ;;  %1652 = vmatmul.bf16.gmra.mxu0 %v3476_v10 }
 0x158   : > { %v1467_v32 = vpop.f32.mrf.mxu2  ;;  %1830 = vmatpush.bf16.msra.mxu3 %v2492_v24 }
 0x159   : > { %v1468_v37 = vadd.f32 %v1467_v32, %v3491_v18  ;;  %v1540_v50 = vpop.f32.mrf.mxu3 }
 0x15a   : > { %v1541_v42 = vadd.f32 %v1540_v50, %v3494_v52  ;;  %v1396_v29 = vpop.f32.mrf.mxu1  ;;  %v2493_v50 = vld [vmem:[#allocation3 + $0x38] sm:$0xf0] }
 0x15b   : > { %v1969_v61 = vpack.c.bf16 %v1468_v37, %v1395_v34  ;;  %v1615_v39 = vpop.f32.mrf.mxu0  ;;  %v1397_v46 = vadd.f32 %v1396_v29, %v3479_v27  ;;  %v2484_v34 = vor.u32 %v2762_v33, %v2483_v11  ;;  %v2759_v37 = vld [vmem:[#allocation3 + $0x1c] sm:$0xf] }
 0x15c   : > { %v1970_v41 = vpack.c.bf16 %v1614_v59, %v1541_v42  ;;  %v1616_v51 = vadd.f32 %v1615_v39, %v3482_v25  ;;  %v2496_v59 = vor.u32 %v2759_v37, %v2493_v50 }
 0x15d   : > { %2069 = vst [vmem:[%s3503_s13] sm:$0xff] %v1969_v61  ;;  %1684 = vmatpush.bf16.msra.mxu1 %v2484_v34 }
 0x15e   : > { %2070 = vst [vmem:[%s3503_s13 + $0x8] sm:$0xff] %v1970_v41  ;;  %1903 = vmatpush.bf16.msra.mxu0 %v2496_v59 }
 0x160   : > { %v1469_v45 = vpop.f32.mrf.mxu2 }
 0x161   : > { %v1470_v48 = vadd.f32 %v1469_v45, %v3491_v18  ;;  %v1542_v49 = vpop.f32.mrf.mxu3 }
 0x162   : > { %v1543_v53 = vadd.f32 %v1542_v49, %v3494_v52  ;;  %v1399_v56 = vpop.f32.mrf.mxu1 }
 0x163   : > { %v1973_v57 = vpack.c.bf16 %v1470_v48, %v1397_v46  ;;  %v1618_v58 = vpop.f32.mrf.mxu0  ;;  %v1400_v1 = vadd.f32 %v1399_v56, %v3479_v27 }
 0x164   : > { %v1974_v62 = vpack.c.bf16 %v1616_v51, %v1543_v53  ;;  %v1619_v7 = vadd.f32 %v1618_v58, %v3482_v25 }
 0x165   : > { %2073 = vst [vmem:[%s3503_s13 + $0x20] sm:$0xff] %v1973_v57 }
 0x166   : > { %1438 = vmatmul.bf16.gmra.mxu1 %v3511_v60  ;;  %1511 = vmatmul.bf16.gmra.mxu2 %v3511_v60  ;;  %2074 = vst [vmem:[%s3503_s13 + $0x28] sm:$0xff] %v1974_v62 }
 0x167   : > { %1584 = vmatmul.bf16.gmra.mxu3 %v3511_v60  ;;  %1657 = vmatmul.bf16.gmra.mxu0 %v3511_v60 }
 0x168   : > { %v1472_v63 = vpop.f32.mrf.mxu2 }
 0x169   : > { %v1473_v2 = vadd.f32 %v1472_v63, %v3491_v18  ;;  %v1545_v6 = vpop.f32.mrf.mxu3 }
 0x16a   : > { %v1546_v8 = vadd.f32 %v1545_v6, %v3494_v52  ;;  %v1401_v9 = vpop.f32.mrf.mxu1  ;;  %v3547_v6 = vld [vmem:[#allocation2 + $0x58] sm:$0xff] }
 0x16b   : > { %v1977_v12 = vpack.c.bf16 %v1473_v2, %v1400_v1  ;;  %v1620_v13 = vpop.f32.mrf.mxu0  ;;  %v1402_v35 = vadd.f32 %v1401_v9, %v3479_v27 }
 0x16c   : > { %v1978_v14 = vpack.c.bf16 %v1619_v7, %v1546_v8  ;;  %v1621_v28 = vadd.f32 %v1620_v13, %v3482_v25 }
 0x16d   : > { %2077 = vst [vmem:[%s3503_s13 + $0x40] sm:$0xff] %v1977_v12 }
 0x16e   : > { %2078 = vst [vmem:[%s3503_s13 + $0x48] sm:$0xff] %v1978_v14 }
 0x170   : > { %v1474_v23 = vpop.f32.mrf.mxu2 }
 0x171   : > { %v1475_v26 = vadd.f32 %v1474_v23, %v3491_v18  ;;  %v1547_v4 = vpop.f32.mrf.mxu3  ;;  %v906_v23 = vld [vmem:[#allocation2 + $0x60] sm:$0xf] }
 0x172   : > { %v1548_v30 = vadd.f32 %v1547_v4, %v3494_v52  ;;  %v1038_v24 = vunpack.c.l.b16 %v906_v23 }
 0x173   : > { %v1404_v44 = vpop.f32.mrf.mxu1  ;;  %v1981_v31 = vpack.c.bf16 %v1475_v26, %v1402_v35 }
 0x174   : > { %v1623_v32 = vpop.f32.mrf.mxu0  ;;  %v1982_v0 = vpack.c.bf16 %v1621_v28, %v1548_v30  ;;  %v1405_v42 = vadd.f32 %v1404_v44, %v3479_v27  ;;  %v3565_v11 = vpack.c.b16 %v1038_v24, %v1038_v24 }
 0x175   : > { %2081 = vst [vmem:[%s3503_s13 + $0x60] sm:$0xff] %v1981_v31  ;;  %v1624_v39 = vadd.f32 %v1623_v32, %v3482_v25 }
 0x176   : > { %1443 = vmatmul.bf16.gmra.mxu1 %v3529_v40  ;;  %1516 = vmatmul.bf16.gmra.mxu2 %v3529_v40  ;;  %2082 = vst [vmem:[%s3503_s13 + $0x68] sm:$0xff] %v1982_v0 }
 0x177   : > { %1589 = vmatmul.bf16.gmra.mxu3 %v3529_v40  ;;  %1662 = vmatmul.bf16.gmra.mxu0 %v3529_v40 }
 0x179   : > { %v1477_v38 = vpop.f32.mrf.mxu2 }
 0x17a   : > { %v1478_v29 = vadd.f32 %v1477_v38, %v3491_v18  ;;  %v1550_v61 = vpop.f32.mrf.mxu3 }
 0x17b   : > { %v1551_v41 = vadd.f32 %v1550_v61, %v3494_v52  ;;  %v1406_v45 = vpop.f32.mrf.mxu1 }
 0x17c   : > { %v1985_v46 = vpack.c.bf16 %v1478_v29, %v1405_v42  ;;  %v1625_v48 = vpop.f32.mrf.mxu0  ;;  %v1407_v53 = vadd.f32 %v1406_v45, %v3479_v27 }
 0x17d   : > { %v1986_v49 = vpack.c.bf16 %v1624_v39, %v1551_v41  ;;  %v1626_v58 = vadd.f32 %v1625_v48, %v3482_v25 }
 0x17e   : > { %2085 = vst [vmem:[%s3503_s13 + $0x80] sm:$0xff] %v1985_v46 }
 0x17f   : > { %2086 = vst [vmem:[%s3503_s13 + $0x88] sm:$0xff] %v1986_v49 }
 0x181   : > { %v1479_v51 = vpop.f32.mrf.mxu2 }
 0x182   : > { %v1480_v56 = vadd.f32 %v1479_v51, %v3491_v18  ;;  %v1552_v57 = vpop.f32.mrf.mxu3 }
 0x183   : > { %v1553_v62 = vadd.f32 %v1552_v57, %v3494_v52  ;;  %v1409_v63 = vpop.f32.mrf.mxu1 }
 0x184   : > { %v1989_v1 = vpack.c.bf16 %v1480_v56, %v1407_v53  ;;  %v1628_v2 = vpop.f32.mrf.mxu0  ;;  %v1410_v9 = vadd.f32 %v1409_v63, %v3479_v27 }
 0x185   : > { %v1990_v7 = vpack.c.bf16 %v1626_v58, %v1553_v62  ;;  %v1629_v14 = vadd.f32 %v1628_v2, %v3482_v25 }
 0x186   : > { %2089 = vst [vmem:[%s3503_s13 + $0xa0] sm:$0xff] %v1989_v1  ;;  %1448 = vmatmul.bf16.gmra.mxu1 %v3547_v6  ;;  %1521 = vmatmul.bf16.gmra.mxu2 %v3547_v6 }
 0x187   : > { %2090 = vst [vmem:[%s3503_s13 + $0xa8] sm:$0xff] %v1990_v7  ;;  %1594 = vmatmul.bf16.gmra.mxu3 %v3547_v6  ;;  %1667 = vmatmul.bf16.gmra.mxu0 %v3547_v6 }
 0x189   : > { %v1482_v8 = vpop.f32.mrf.mxu2 }
 0x18a   : > { %v1483_v12 = vadd.f32 %v1482_v8, %v3491_v18  ;;  %v1555_v13 = vpop.f32.mrf.mxu3 }
 0x18b   : > { %v1556_v15 = vadd.f32 %v1555_v13, %v3494_v52  ;;  %v1411_v16 = vpop.f32.mrf.mxu1 }
 0x18c   : > { %v1993_v17 = vpack.c.bf16 %v1483_v12, %v1410_v9  ;;  %v1630_v19 = vpop.f32.mrf.mxu0  ;;  %v1412_v26 = vadd.f32 %v1411_v16, %v3479_v27 }
 0x18d   : > { %v1994_v20 = vpack.c.bf16 %v1629_v14, %v1556_v15  ;;  %v1631_v30 = vadd.f32 %v1630_v19, %v3482_v25 }
 0x18e   : > { %2093 = vst [vmem:[%s3503_s13 + $0xc0] sm:$0xff] %v1993_v17 }
 0x18f   : > { %2094 = vst [vmem:[%s3503_s13 + $0xc8] sm:$0xff] %v1994_v20 }
 0x191   : > { %v1484_v35 = vpop.f32.mrf.mxu2 }
 0x192   : > { %v1485_v4 = vadd.f32 %v1484_v35, %v3491_v18  ;;  %v1557_v28 = vpop.f32.mrf.mxu3 }
 0x193   : > { %v1558_v44 = vadd.f32 %v1557_v28, %v3494_v52  ;;  %v1414_v31 = vpop.f32.mrf.mxu1 }
 0x194   : > { %v1997_v32 = vpack.c.bf16 %v1485_v4, %v1412_v26  ;;  %v1633_v0 = vpop.f32.mrf.mxu0  ;;  %v1415_v37 = vadd.f32 %v1414_v31, %v3479_v27 }
 0x195   : > { %v1998_v33 = vpack.c.bf16 %v1631_v30, %v1558_v44  ;;  %v1634_v59 = vadd.f32 %v1633_v0, %v3482_v25 }
 0x196   : > { %2097 = vst [vmem:[%s3503_s13 + $0xe0] sm:$0xff] %v1997_v32  ;;  %1453 = vmatmul.bf16.gmra.mxu1 %v3565_v11  ;;  %1526 = vmatmul.bf16.gmra.mxu2 %v3565_v11 }
 0x197   : > { %2098 = vst [vmem:[%s3503_s13 + $0xe8] sm:$0xff] %v1998_v33  ;;  %1599 = vmatmul.bf16.gmra.mxu3 %v3565_v11  ;;  %1672 = vmatmul.bf16.gmra.mxu0 %v3565_v11 }
 0x199   : > { %v1487_v34 = vpop.f32.mrf.mxu2 }
 0x19a   : > { %v1488_v50 = vadd.f32 %v1487_v34, %v3491_v18  ;;  %v1560_v38 = vpop.f32.mrf.mxu3 }
 0x19b   : > { %v1561_v42 = vadd.f32 %v1560_v38, %v3494_v52  ;;  %v1416_v29 = vpop.f32.mrf.mxu1 }
 0x19c   : > { %v2001_v61 = vpack.c.bf16 %v1488_v50, %v1415_v37  ;;  %v1635_v39 = vpop.f32.mrf.mxu0  ;;  %v1417_v46 = vadd.f32 %v1416_v29, %v3479_v27 }
 0x19d   : > { %v2002_v41 = vpack.c.bf16 %v1634_v59, %v1561_v42  ;;  %v1636_v51 = vadd.f32 %v1635_v39, %v3482_v25 }
 0x19e   : > { %2101 = vst [vmem:[%s3503_s13 + $0x100] sm:$0xff] %v2001_v61 }
 0x19f   : > { %2102 = vst [vmem:[%s3503_s13 + $0x108] sm:$0xff] %v2002_v41 }
 0x1a1   : > { %v1489_v45 = vpop.f32.mrf.mxu2 }
 0x1a2   : > { %v1490_v48 = vadd.f32 %v1489_v45, %v3491_v18  ;;  %v1562_v49 = vpop.f32.mrf.mxu3 }
 0x1a3   : > { %v1563_v53 = vadd.f32 %v1562_v49, %v3494_v52  ;;  %v1419_v56 = vpop.f32.mrf.mxu1 }
 0x1a4   : > { %v2005_v57 = vpack.c.bf16 %v1490_v48, %v1417_v46  ;;  %v1638_v58 = vpop.f32.mrf.mxu0  ;;  %v1420_v1 = vadd.f32 %v1419_v56, %v3479_v27 }
 0x1a5   : > { %v2006_v62 = vpack.c.bf16 %v1636_v51, %v1563_v53  ;;  %v1639_v8 = vadd.f32 %v1638_v58, %v3482_v25 }
 0x1a6   : > { %2105 = vst [vmem:[%s3503_s13 + $0x120] sm:$0xff] %v2005_v57  ;;  %1685 = vmatmul.bf16.vlgmr.msra.gmra.mxu1 %v3398_v55  ;;  %1758 = vmatmul.bf16.vlgmr.msra.gmra.mxu2 %v3398_v55 }
 0x1a7   : > { %2106 = vst [vmem:[%s3503_s13 + $0x128] sm:$0xff] %v2006_v62  ;;  %1831 = vmatmul.bf16.vlgmr.msra.gmra.mxu3 %v3398_v55  ;;  %1904 = vmatmul.bf16.vlgmr.msra.gmra.mxu0 %v3398_v55 }
 0x1a9   : > { %v1492_v63 = vpop.f32.mrf.mxu2 }
 0x1aa   : > { %v1493_v2 = vadd.f32 %v1492_v63, %v3491_v18  ;;  %v1565_v7 = vpop.f32.mrf.mxu3 }
 0x1ab   : > { %v1566_v9 = vadd.f32 %v1565_v7, %v3494_v52  ;;  %v1421_v12 = vpop.f32.mrf.mxu1 }
 0x1ac   : > { %v2009_v13 = vpack.c.bf16 %v1493_v2, %v1420_v1  ;;  %v1640_v14 = vpop.f32.mrf.mxu0  ;;  %v1422_v55 = vadd.f32 %v1421_v12, %v3479_v27 }
 0x1ad   : > { %v2010_v15 = vpack.c.bf16 %v1639_v8, %v1566_v9  ;;  %v1641_v20 = vadd.f32 %v1640_v14, %v3482_v25 }
 0x1ae   : > { %2109 = vst [vmem:[%s3503_s13 + $0x140] sm:$0xff] %v2009_v13 }
 0x1af   : > { %2110 = vst [vmem:[%s3503_s13 + $0x148] sm:$0xff] %v2010_v15 }
 0x1b1   : > { %v1494_v16 = vpop.f32.mrf.mxu2 }
 0x1b2   : > { %v1495_v17 = vadd.f32 %v1494_v16, %v3491_v18  ;;  %v1567_v19 = vpop.f32.mrf.mxu3 }
 0x1b3   : > { %v1568_v23 = vadd.f32 %v1567_v19, %v3494_v52  ;;  %v1424_v24 = vpop.f32.mrf.mxu1 }
 0x1b4   : > { %v2013_v35 = vpack.c.bf16 %v1495_v17, %v1422_v55  ;;  %v1643_v26 = vpop.f32.mrf.mxu0  ;;  %v1425_v30 = vadd.f32 %v1424_v24, %v3479_v27 }
 0x1b5   : > { %v2014_v4 = vpack.c.bf16 %v1641_v20, %v1568_v23  ;;  %v1644_v32 = vadd.f32 %v1643_v26, %v3482_v25 }
 0x1b6   : > { %2113 = vst [vmem:[%s3503_s13 + $0x160] sm:$0xff] %v2013_v35  ;;  %1690 = vmatmul.bf16.gmra.mxu1 %v3416_v54  ;;  %1763 = vmatmul.bf16.gmra.mxu2 %v3416_v54 }
 0x1b7   : > { %2114 = vst [vmem:[%s3503_s13 + $0x168] sm:$0xff] %v2014_v4  ;;  %1836 = vmatmul.bf16.gmra.mxu3 %v3416_v54  ;;  %1909 = vmatmul.bf16.gmra.mxu0 %v3416_v54 }
 0x1b9   : > { %v1497_v28 = vpop.f32.mrf.mxu2 }
 0x1ba   : > { %v1498_v44 = vadd.f32 %v1497_v28, %v3491_v18  ;;  %v1570_v31 = vpop.f32.mrf.mxu3 }
 0x1bb   : > { %v1571_v0 = vadd.f32 %v1570_v31, %v3494_v52  ;;  %v1426_v33 = vpop.f32.mrf.mxu1 }
 0x1bc   : > { %v2017_v34 = vpack.c.bf16 %v1498_v44, %v1425_v30  ;;  %v1645_v37 = vpop.f32.mrf.mxu0  ;;  %v1427_v54 = vadd.f32 %v1426_v33, %v3479_v27 }
 0x1bd   : > { %v2018_v50 = vpack.c.bf16 %v1644_v32, %v1571_v0  ;;  %v1646_v29 = vadd.f32 %v1645_v37, %v3482_v25 }
 0x1be   : > { %2117 = vst [vmem:[%s3503_s13 + $0x180] sm:$0xff] %v2017_v34 }
 0x1bf   : > { %2118 = vst [vmem:[%s3503_s13 + $0x188] sm:$0xff] %v2018_v50 }
 0x1c1   : > { %v1499_v38 = vpop.f32.mrf.mxu2 }
 0x1c2   : > { %v1500_v59 = vadd.f32 %v1499_v38, %v3491_v18  ;;  %v1572_v42 = vpop.f32.mrf.mxu3 }
 0x1c3   : > { %v1573_v61 = vadd.f32 %v1572_v42, %v3494_v52  ;;  %v1429_v39 = vpop.f32.mrf.mxu1 }
 0x1c4   : > { %v2021_v41 = vpack.c.bf16 %v1500_v59, %v1427_v54  ;;  %v1648_v45 = vpop.f32.mrf.mxu0  ;;  %v1430_v49 = vadd.f32 %v1429_v39, %v3479_v27 }
 0x1c5   : > { %v2022_v46 = vpack.c.bf16 %v1646_v29, %v1573_v61  ;;  %v1649_v56 = vadd.f32 %v1648_v45, %v3482_v25 }
 0x1c6   : > { %2121 = vst [vmem:[%s3503_s13 + $0x1a0] sm:$0xff] %v2021_v41  ;;  %1695 = vmatmul.bf16.gmra.mxu1 %v3430_v36  ;;  %1768 = vmatmul.bf16.gmra.mxu2 %v3430_v36 }
 0x1c7   : > { %2122 = vst [vmem:[%s3503_s13 + $0x1a8] sm:$0xff] %v2022_v46  ;;  %1841 = vmatmul.bf16.gmra.mxu3 %v3430_v36  ;;  %1914 = vmatmul.bf16.gmra.mxu0 %v3430_v36 }
 0x1c9   : > { %v1502_v48 = vpop.f32.mrf.mxu2 }
 0x1ca   : > { %v1503_v51 = vadd.f32 %v1502_v48, %v3491_v18  ;;  %v1575_v53 = vpop.f32.mrf.mxu3 }
 0x1cb   : > { %v1576_v57 = vadd.f32 %v1575_v53, %v3494_v52  ;;  %v1431_v58 = vpop.f32.mrf.mxu1 }
 0x1cc   : > { %v2025_v62 = vpack.c.bf16 %v1503_v51, %v1430_v49  ;;  %v1650_v63 = vpop.f32.mrf.mxu0  ;;  %v1432_v36 = vadd.f32 %v1431_v58, %v3479_v27 }
 0x1cd   : > { %v2026_v1 = vpack.c.bf16 %v1649_v56, %v1576_v57  ;;  %v1651_v9 = vadd.f32 %v1650_v63, %v3482_v25 }
 0x1ce   : > { %2125 = vst [vmem:[%s3503_s13 + $0x1c0] sm:$0xff] %v2025_v62 }
 0x1cf   : > { %2126 = vst [vmem:[%s3503_s13 + $0x1c8] sm:$0xff] %v2026_v1 }
 0x1d1   : > { %v1504_v2 = vpop.f32.mrf.mxu2 }
 0x1d2   : > { %v1505_v7 = vadd.f32 %v1504_v2, %v3491_v18  ;;  %v1577_v8 = vpop.f32.mrf.mxu3 }
 0x1d3   : > { %v1578_v12 = vadd.f32 %v1577_v8, %v3494_v52  ;;  %v1434_v13 = vpop.f32.mrf.mxu1 }
 0x1d4   : > { %v2029_v14 = vpack.c.bf16 %v1505_v7, %v1432_v36  ;;  %v1653_v15 = vpop.f32.mrf.mxu0  ;;  %v1435_v17 = vadd.f32 %v1434_v13, %v3479_v27 }
 0x1d5   : > { %v2030_v16 = vpack.c.bf16 %v1651_v9, %v1578_v12  ;;  %v1654_v23 = vadd.f32 %v1653_v15, %v3482_v25 }
 0x1d6   : > { %2129 = vst [vmem:[%s3503_s13 + $0x1e0] sm:$0xff] %v2029_v14  ;;  %1700 = vmatmul.bf16.gmra.mxu1 %v3440_v43  ;;  %1773 = vmatmul.bf16.gmra.mxu2 %v3440_v43 }
 0x1d7   : > { %2130 = vst [vmem:[%s3503_s13 + $0x1e8] sm:$0xff] %v2030_v16  ;;  %1846 = vmatmul.bf16.gmra.mxu3 %v3440_v43  ;;  %1919 = vmatmul.bf16.gmra.mxu0 %v3440_v43 }
 0x1d9   : > { %v1507_v55 = vpop.f32.mrf.mxu2 }
 0x1da   : > { %v1508_v19 = vadd.f32 %v1507_v55, %v3491_v18  ;;  %v1580_v20 = vpop.f32.mrf.mxu3 }
 0x1db   : > { %v1581_v24 = vadd.f32 %v1580_v20, %v3494_v52  ;;  %v1436_v35 = vpop.f32.mrf.mxu1 }
 0x1dc   : > { %v2033_v26 = vpack.c.bf16 %v1508_v19, %v1435_v17  ;;  %v1655_v4 = vpop.f32.mrf.mxu0  ;;  %v1437_v43 = vadd.f32 %v1436_v35, %v3479_v27 }
 0x1dd   : > { %v2034_v28 = vpack.c.bf16 %v1654_v23, %v1581_v24  ;;  %v1656_v32 = vadd.f32 %v1655_v4, %v3482_v25 }
 0x1de   : > { %2133 = vst [vmem:[%s3503_s13 + $0x200] sm:$0xff] %v2033_v26 }
 0x1df   : > { %2134 = vst [vmem:[%s3503_s13 + $0x208] sm:$0xff] %v2034_v28 }
 0x1e1   : > { %v1509_v30 = vpop.f32.mrf.mxu2 }
 0x1e2   : > { %v1510_v44 = vadd.f32 %v1509_v30, %v3491_v18  ;;  %v1582_v31 = vpop.f32.mrf.mxu3 }
 0x1e3   : > { %v1583_v0 = vadd.f32 %v1582_v31, %v3494_v52  ;;  %v1439_v33 = vpop.f32.mrf.mxu1 }
 0x1e4   : > { %v2037_v34 = vpack.c.bf16 %v1510_v44, %v1437_v43  ;;  %v1658_v37 = vpop.f32.mrf.mxu0  ;;  %v1440_v54 = vadd.f32 %v1439_v33, %v3479_v27 }
 0x1e5   : > { %v2038_v50 = vpack.c.bf16 %v1656_v32, %v1583_v0  ;;  %v1659_v29 = vadd.f32 %v1658_v37, %v3482_v25 }
 0x1e6   : > { %2137 = vst [vmem:[%s3503_s13 + $0x220] sm:$0xff] %v2037_v34  ;;  %1705 = vmatmul.bf16.gmra.mxu1 %v3446_v47  ;;  %1778 = vmatmul.bf16.gmra.mxu2 %v3446_v47 }
 0x1e7   : > { %2138 = vst [vmem:[%s3503_s13 + $0x228] sm:$0xff] %v2038_v50  ;;  %1851 = vmatmul.bf16.gmra.mxu3 %v3446_v47  ;;  %1924 = vmatmul.bf16.gmra.mxu0 %v3446_v47 }
 0x1e9   : > { %v1512_v38 = vpop.f32.mrf.mxu2 }
 0x1ea   : > { %v1513_v59 = vadd.f32 %v1512_v38, %v3491_v18  ;;  %v1585_v42 = vpop.f32.mrf.mxu3 }
 0x1eb   : > { %v1586_v61 = vadd.f32 %v1585_v42, %v3494_v52  ;;  %v1441_v39 = vpop.f32.mrf.mxu1 }
 0x1ec   : > { %v2041_v41 = vpack.c.bf16 %v1513_v59, %v1440_v54  ;;  %v1660_v45 = vpop.f32.mrf.mxu0  ;;  %v1442_v47 = vadd.f32 %v1441_v39, %v3479_v27 }
 0x1ed   : > { %v2042_v46 = vpack.c.bf16 %v1659_v29, %v1586_v61  ;;  %v1661_v53 = vadd.f32 %v1660_v45, %v3482_v25 }
 0x1ee   : > { %2141 = vst [vmem:[%s3503_s13 + $0x240] sm:$0xff] %v2041_v41 }
 0x1ef   : > { %2142 = vst [vmem:[%s3503_s13 + $0x248] sm:$0xff] %v2042_v46 }
 0x1f1   : > { %v1514_v48 = vpop.f32.mrf.mxu2 }
 0x1f2   : > { %v1515_v49 = vadd.f32 %v1514_v48, %v3491_v18  ;;  %v1587_v51 = vpop.f32.mrf.mxu3 }
 0x1f3   : > { %v1588_v56 = vadd.f32 %v1587_v51, %v3494_v52  ;;  %v1444_v57 = vpop.f32.mrf.mxu1 }
 0x1f4   : > { %v2045_v58 = vpack.c.bf16 %v1515_v49, %v1442_v47  ;;  %v1663_v62 = vpop.f32.mrf.mxu0  ;;  %v1445_v2 = vadd.f32 %v1444_v57, %v3479_v27 }
 0x1f5   : > { %v2046_v63 = vpack.c.bf16 %v1661_v53, %v1588_v56  ;;  %v1664_v8 = vadd.f32 %v1663_v62, %v3482_v25 }
 0x1f6   : > { %2145 = vst [vmem:[%s3503_s13 + $0x260] sm:$0xff] %v2045_v58  ;;  %1710 = vmatmul.bf16.gmra.mxu1 %v3452_v3  ;;  %1783 = vmatmul.bf16.gmra.mxu2 %v3452_v3 }
 0x1f7   : > { %2146 = vst [vmem:[%s3503_s13 + $0x268] sm:$0xff] %v2046_v63  ;;  %1856 = vmatmul.bf16.gmra.mxu3 %v3452_v3  ;;  %1929 = vmatmul.bf16.gmra.mxu0 %v3452_v3 }
 0x1f9   : > { %v1517_v1 = vpop.f32.mrf.mxu2 }
 0x1fa   : > { %v1518_v36 = vadd.f32 %v1517_v1, %v3491_v18  ;;  %v1590_v7 = vpop.f32.mrf.mxu3  ;;  %v3708_v1 = vperm.slane %v3473_v22, 4 }
 0x1fb   : > { %v1591_v9 = vadd.f32 %v1590_v7, %v3494_v52  ;;  %v1446_v12 = vpop.f32.mrf.mxu1 }
 0x1fc   : > { %v2049_v13 = vpack.c.bf16 %v1518_v36, %v1445_v2  ;;  %v1665_v14 = vpop.f32.mrf.mxu0  ;;  %v1447_v3 = vadd.f32 %v1446_v12, %v3479_v27 }
 0x1fd   : > { %v2050_v15 = vpack.c.bf16 %v1664_v8, %v1591_v9  ;;  %v1666_v19 = vadd.f32 %v1665_v14, %v3482_v25 }
 0x1fe   : > { %2149 = vst [vmem:[%s3503_s13 + $0x280] sm:$0xff] %v2049_v13 }
 0x1ff   : > { %2150 = vst [vmem:[%s3503_s13 + $0x288] sm:$0xff] %v2050_v15 }
 0x201   : > { %v1519_v16 = vpop.f32.mrf.mxu2 }
 0x202   : > { %v1520_v55 = vadd.f32 %v1519_v16, %v3491_v18  ;;  %v1592_v17 = vpop.f32.mrf.mxu3 }
 0x203   : > { %v1593_v20 = vadd.f32 %v1592_v17, %v3494_v52  ;;  %v1449_v23 = vpop.f32.mrf.mxu1 }
 0x204   : > { %v2053_v24 = vpack.c.bf16 %v1520_v55, %v1447_v3  ;;  %v1668_v35 = vpop.f32.mrf.mxu0  ;;  %v1450_v28 = vadd.f32 %v1449_v23, %v3479_v27 }
 0x205   : > { %v2054_v26 = vpack.c.bf16 %v1666_v19, %v1593_v20  ;;  %v1669_v44 = vadd.f32 %v1668_v35, %v3482_v25 }
 0x206   : > { %2153 = vst [vmem:[%s3503_s13 + $0x2a0] sm:$0xff] %v2053_v24  ;;  %1715 = vmatmul.bf16.gmra.mxu1 %v3458_v5  ;;  %1788 = vmatmul.bf16.gmra.mxu2 %v3458_v5 }
 0x207   : > { %2154 = vst [vmem:[%s3503_s13 + $0x2a8] sm:$0xff] %v2054_v26  ;;  %1861 = vmatmul.bf16.gmra.mxu3 %v3458_v5  ;;  %1934 = vmatmul.bf16.gmra.mxu0 %v3458_v5 }
 0x209   : > { %v1522_v4 = vpop.f32.mrf.mxu2 }
 0x20a   : > { %v1523_v30 = vadd.f32 %v1522_v4, %v3491_v18  ;;  %v1595_v43 = vpop.f32.mrf.mxu3 }
 0x20b   : > { %v1596_v31 = vadd.f32 %v1595_v43, %v3494_v52  ;;  %v1451_v32 = vpop.f32.mrf.mxu1 }
 0x20c   : > { %v2057_v0 = vpack.c.bf16 %v1523_v30, %v1450_v28  ;;  %v1670_v33 = vpop.f32.mrf.mxu0  ;;  %v1452_v5 = vadd.f32 %v1451_v32, %v3479_v27 }
 0x20d   : > { %v2058_v34 = vpack.c.bf16 %v1669_v44, %v1596_v31  ;;  %v1671_v54 = vadd.f32 %v1670_v33, %v3482_v25 }
 0x20e   : > { %2157 = vst [vmem:[%s3503_s13 + $0x2c0] sm:$0xff] %v2057_v0 }
 0x20f   : > { %2158 = vst [vmem:[%s3503_s13 + $0x2c8] sm:$0xff] %v2058_v34 }
 0x211   : > { %v1524_v37 = vpop.f32.mrf.mxu2 }
 0x212   : > { %v1525_v50 = vadd.f32 %v1524_v37, %v3491_v18  ;;  %v1597_v38 = vpop.f32.mrf.mxu3 }
 0x213   : > { %v1598_v59 = vadd.f32 %v1597_v38, %v3494_v52  ;;  %v1454_v42 = vpop.f32.mrf.mxu1 }
 0x214   : > { %v2061_v29 = vpack.c.bf16 %v1525_v50, %v1452_v5  ;;  %v1673_v61 = vpop.f32.mrf.mxu0  ;;  %v1455_v45 = vadd.f32 %v1454_v42, %v3479_v27  ;;  %v3713_v27 = vperm.slane %v3473_v22, 5 }
 0x215   : > { %v2062_v39 = vpack.c.bf16 %v1671_v54, %v1598_v59  ;;  %v1674_v47 = vadd.f32 %v1673_v61, %v3482_v25  ;;  %v3716_v25 = vperm.slane %v3473_v22, 7 }
 0x216   : > { %2161 = vst [vmem:[%s3503_s13 + $0x2e0] sm:$0xff] %v2061_v29  ;;  %1720 = vmatmul.bf16.gmra.mxu1 %v3464_v21  ;;  %1793 = vmatmul.bf16.gmra.mxu2 %v3464_v21 }
 0x217   : > { %2162 = vst [vmem:[%s3503_s13 + $0x2e8] sm:$0xff] %v2062_v39  ;;  %1866 = vmatmul.bf16.gmra.mxu3 %v3464_v21  ;;  %1939 = vmatmul.bf16.gmra.mxu0 %v3464_v21 }
 0x219   : > { %v1527_v41 = vpop.f32.mrf.mxu2 }
 0x21a   : > { %v1528_v46 = vadd.f32 %v1527_v41, %v3491_v18  ;;  %v1600_v48 = vpop.f32.mrf.mxu3  ;;  %v3721_v18 = vperm.slane %v3473_v22, 6 }
 0x21b   : > { %v1601_v49 = vadd.f32 %v1600_v48, %v3494_v52  ;;  %v1456_v51 = vpop.f32.mrf.mxu1 }
 0x21c   : > { %v2065_v53 = vpack.c.bf16 %v1528_v46, %v1455_v45  ;;  %v1675_v56 = vpop.f32.mrf.mxu0 }
 0x21d   : > { %v2066_v57 = vpack.c.bf16 %v1674_v47, %v1601_v49 }
 0x21e   : > { %2165 = vst [vmem:[%s3503_s13 + $0x300] sm:$0xff] %v2065_v53 }
 0x21f   : > { %2166 = vst [vmem:[%s3503_s13 + $0x308] sm:$0xff] %v2066_v57 }
 0x221   : > { %v1529_v58 = vpop.f32.mrf.mxu2 }
 0x222   : > { %v1602_v62 = vpop.f32.mrf.mxu3 }
 0x223   : > { %v1686_v63 = vpop.f32.mrf.mxu1 }
 0x224   : > { %v1905_v21 = vpop.f32.mrf.mxu0  ;;  %v1687_v2 = vadd.f32 %v1686_v63, %v3708_v1 }
 0x225   : > { %v1906_v8 = vadd.f32 %v1905_v21, %v3716_v25 }
 0x226   : > { %1725 = vmatmul.bf16.gmra.mxu1 %v3476_v10  ;;  %1798 = vmatmul.bf16.gmra.mxu2 %v3476_v10 }
 0x227   : > { %1871 = vmatmul.bf16.gmra.mxu3 %v3476_v10  ;;  %1944 = vmatmul.bf16.gmra.mxu0 %v3476_v10 }
 0x229   : > { %v1759_v52 = vpop.f32.mrf.mxu2 }
 0x22a   : > { %v1760_v36 = vadd.f32 %v1759_v52, %v3713_v27  ;;  %v1832_v7 = vpop.f32.mrf.mxu3 }
 0x22b   : > { %v1833_v9 = vadd.f32 %v1832_v7, %v3721_v18  ;;  %v1688_v12 = vpop.f32.mrf.mxu1 }
 0x22c   : > { %v1971_v13 = vpack.c.bf16 %v1760_v36, %v1687_v2  ;;  %v1907_v14 = vpop.f32.mrf.mxu0  ;;  %v1689_v10 = vadd.f32 %v1688_v12, %v3708_v1 }
 0x22d   : > { %v1972_v15 = vpack.c.bf16 %v1906_v8, %v1833_v9  ;;  %v1908_v55 = vadd.f32 %v1907_v14, %v3716_v25 }
 0x22e   : > { %2071 = vst [vmem:[%s3503_s13 + $0x10] sm:$0xff] %v1971_v13 }
 0x22f   : > { %2072 = vst [vmem:[%s3503_s13 + $0x18] sm:$0xff] %v1972_v15 }
 0x231   : > { %v1761_v22 = vpop.f32.mrf.mxu2 }
 0x232   : > { %v1762_v16 = vadd.f32 %v1761_v22, %v3713_v27  ;;  %v1834_v3 = vpop.f32.mrf.mxu3 }
 0x233   : > { %v1835_v17 = vadd.f32 %v1834_v3, %v3721_v18  ;;  %v1691_v19 = vpop.f32.mrf.mxu1 }
 0x234   : > { %v1975_v20 = vpack.c.bf16 %v1762_v16, %v1689_v10  ;;  %v1910_v23 = vpop.f32.mrf.mxu0  ;;  %v1692_v26 = vadd.f32 %v1691_v19, %v3708_v1 }
 0x235   : > { %v1976_v24 = vpack.c.bf16 %v1908_v55, %v1835_v17  ;;  %v1911_v30 = vadd.f32 %v1910_v23, %v3716_v25 }
 0x236   : > { %2075 = vst [vmem:[%s3503_s13 + $0x30] sm:$0xff] %v1975_v20  ;;  %1730 = vmatmul.bf16.gmra.mxu1 %v3511_v60  ;;  %1803 = vmatmul.bf16.gmra.mxu2 %v3511_v60 }
 0x237   : > { %2076 = vst [vmem:[%s3503_s13 + $0x38] sm:$0xff] %v1976_v24  ;;  %1876 = vmatmul.bf16.gmra.mxu3 %v3511_v60  ;;  %1949 = vmatmul.bf16.gmra.mxu0 %v3511_v60 }
 0x239   : > { %v1764_v35 = vpop.f32.mrf.mxu2 }
 0x23a   : > { %v1765_v4 = vadd.f32 %v1764_v35, %v3713_v27  ;;  %v1837_v28 = vpop.f32.mrf.mxu3 }
 0x23b   : > { %v1838_v43 = vadd.f32 %v1837_v28, %v3721_v18  ;;  %v1693_v44 = vpop.f32.mrf.mxu1 }
 0x23c   : > { %v1979_v31 = vpack.c.bf16 %v1765_v4, %v1692_v26  ;;  %v1912_v32 = vpop.f32.mrf.mxu0  ;;  %v1694_v60 = vadd.f32 %v1693_v44, %v3708_v1 }
 0x23d   : > { %v1980_v0 = vpack.c.bf16 %v1911_v30, %v1838_v43  ;;  %v1913_v5 = vadd.f32 %v1912_v32, %v3716_v25 }
 0x23e   : > { %2079 = vst [vmem:[%s3503_s13 + $0x50] sm:$0xff] %v1979_v31 }
 0x23f   : > { %2080 = vst [vmem:[%s3503_s13 + $0x58] sm:$0xff] %v1980_v0 }
 0x241   : > { %v1766_v33 = vpop.f32.mrf.mxu2 }
 0x242   : > { %v1767_v34 = vadd.f32 %v1766_v33, %v3713_v27  ;;  %v1839_v37 = vpop.f32.mrf.mxu3 }
 0x243   : > { %v1840_v50 = vadd.f32 %v1839_v37, %v3721_v18  ;;  %v1696_v38 = vpop.f32.mrf.mxu1 }
 0x244   : > { %v1983_v54 = vpack.c.bf16 %v1767_v34, %v1694_v60  ;;  %v1915_v59 = vpop.f32.mrf.mxu0  ;;  %v1697_v61 = vadd.f32 %v1696_v38, %v3708_v1 }
 0x245   : > { %v1984_v42 = vpack.c.bf16 %v1913_v5, %v1840_v50  ;;  %v1916_v45 = vadd.f32 %v1915_v59, %v3716_v25 }
 0x246   : > { %2083 = vst [vmem:[%s3503_s13 + $0x70] sm:$0xff] %v1983_v54  ;;  %1735 = vmatmul.bf16.gmra.mxu1 %v3529_v40  ;;  %1808 = vmatmul.bf16.gmra.mxu2 %v3529_v40 }
 0x247   : > { %2084 = vst [vmem:[%s3503_s13 + $0x78] sm:$0xff] %v1984_v42  ;;  %1881 = vmatmul.bf16.gmra.mxu3 %v3529_v40  ;;  %1954 = vmatmul.bf16.gmra.mxu0 %v3529_v40 }
 0x249   : > { %v1769_v29 = vpop.f32.mrf.mxu2 }
 0x24a   : > { %v1770_v39 = vadd.f32 %v1769_v29, %v3713_v27  ;;  %v1842_v41 = vpop.f32.mrf.mxu3 }
 0x24b   : > { %v1843_v46 = vadd.f32 %v1842_v41, %v3721_v18  ;;  %v1698_v48 = vpop.f32.mrf.mxu1 }
 0x24c   : > { %v1987_v47 = vpack.c.bf16 %v1770_v39, %v1697_v61  ;;  %v1917_v49 = vpop.f32.mrf.mxu0  ;;  %v1699_v40 = vadd.f32 %v1698_v48, %v3708_v1 }
 0x24d   : > { %v1988_v51 = vpack.c.bf16 %v1916_v45, %v1843_v46  ;;  %v1918_v58 = vadd.f32 %v1917_v49, %v3716_v25 }
 0x24e   : > { %2087 = vst [vmem:[%s3503_s13 + $0x90] sm:$0xff] %v1987_v47 }
 0x24f   : > { %2088 = vst [vmem:[%s3503_s13 + $0x98] sm:$0xff] %v1988_v51 }
 0x251   : > { %v1771_v53 = vpop.f32.mrf.mxu2 }
 0x252   : > { %v1772_v56 = vadd.f32 %v1771_v53, %v3713_v27  ;;  %v1844_v57 = vpop.f32.mrf.mxu3 }
 0x253   : > { %v1845_v62 = vadd.f32 %v1844_v57, %v3721_v18  ;;  %v1701_v63 = vpop.f32.mrf.mxu1 }
 0x254   : > { %v1991_v21 = vpack.c.bf16 %v1772_v56, %v1699_v40  ;;  %v1920_v52 = vpop.f32.mrf.mxu0  ;;  %v1702_v7 = vadd.f32 %v1701_v63, %v3708_v1 }
 0x255   : > { %v1992_v2 = vpack.c.bf16 %v1918_v58, %v1845_v62  ;;  %v1921_v12 = vadd.f32 %v1920_v52, %v3716_v25 }
 0x256   : > { %2091 = vst [vmem:[%s3503_s13 + $0xb0] sm:$0xff] %v1991_v21  ;;  %1740 = vmatmul.bf16.gmra.mxu1 %v3547_v6  ;;  %1813 = vmatmul.bf16.gmra.mxu2 %v3547_v6 }
 0x257   : > { %2092 = vst [vmem:[%s3503_s13 + $0xb8] sm:$0xff] %v1992_v2  ;;  %1886 = vmatmul.bf16.gmra.mxu3 %v3547_v6  ;;  %1959 = vmatmul.bf16.gmra.mxu0 %v3547_v6 }
 0x259   : > { %v1774_v36 = vpop.f32.mrf.mxu2 }
 0x25a   : > { %v1775_v8 = vadd.f32 %v1774_v36, %v3713_v27  ;;  %v1847_v9 = vpop.f32.mrf.mxu3 }
 0x25b   : > { %v1848_v13 = vadd.f32 %v1847_v9, %v3721_v18  ;;  %v1703_v14 = vpop.f32.mrf.mxu1 }
 0x25c   : > { %v1995_v15 = vpack.c.bf16 %v1775_v8, %v1702_v7  ;;  %v1922_v22 = vpop.f32.mrf.mxu0  ;;  %v1704_v6 = vadd.f32 %v1703_v14, %v3708_v1 }
 0x25d   : > { %v1996_v10 = vpack.c.bf16 %v1921_v12, %v1848_v13  ;;  %v1923_v17 = vadd.f32 %v1922_v22, %v3716_v25 }
 0x25e   : > { %2095 = vst [vmem:[%s3503_s13 + $0xd0] sm:$0xff] %v1995_v15 }
 0x25f   : > { %2096 = vst [vmem:[%s3503_s13 + $0xd8] sm:$0xff] %v1996_v10 }
 0x261   : > { %v1776_v16 = vpop.f32.mrf.mxu2 }
 0x262   : > { %v1777_v3 = vadd.f32 %v1776_v16, %v3713_v27  ;;  %v1849_v55 = vpop.f32.mrf.mxu3 }
 0x263   : > { %v1850_v19 = vadd.f32 %v1849_v55, %v3721_v18  ;;  %v1706_v20 = vpop.f32.mrf.mxu1 }
 0x264   : > { %v1999_v23 = vpack.c.bf16 %v1777_v3, %v1704_v6  ;;  %v1925_v24 = vpop.f32.mrf.mxu0  ;;  %v1707_v4 = vadd.f32 %v1706_v20, %v3708_v1 }
 0x265   : > { %v2000_v35 = vpack.c.bf16 %v1923_v17, %v1850_v19  ;;  %v1926_v43 = vadd.f32 %v1925_v24, %v3716_v25 }
 0x266   : > { %2099 = vst [vmem:[%s3503_s13 + $0xf0] sm:$0xff] %v1999_v23  ;;  %1745 = vmatmul.bf16.gmra.mxu1 %v3565_v11  ;;  %1818 = vmatmul.bf16.gmra.mxu2 %v3565_v11 }
 0x267   : > { %2100 = vst [vmem:[%s3503_s13 + $0xf8] sm:$0xff] %v2000_v35  ;;  %1891 = vmatmul.bf16.gmra.mxu3 %v3565_v11  ;;  %1964 = vmatmul.bf16.gmra.mxu0 %v3565_v11 }
 0x269   : > { %v1779_v26 = vpop.f32.mrf.mxu2 }
 0x26a   : > { %v1780_v28 = vadd.f32 %v1779_v26, %v3713_v27  ;;  %v1852_v30 = vpop.f32.mrf.mxu3 }
 0x26b   : > { %v1853_v44 = vadd.f32 %v1852_v30, %v3721_v18  ;;  %v1708_v31 = vpop.f32.mrf.mxu1 }
 0x26c   : > { %v2003_v32 = vpack.c.bf16 %v1780_v28, %v1707_v4  ;;  %v1927_v0 = vpop.f32.mrf.mxu0  ;;  %v1709_v11 = vadd.f32 %v1708_v31, %v3708_v1 }
 0x26d   : > { %v2004_v33 = vpack.c.bf16 %v1926_v43, %v1853_v44  ;;  %v1928_v5 = vadd.f32 %v1927_v0, %v3716_v25 }
 0x26e   : > { %2103 = vst [vmem:[%s3503_s13 + $0x110] sm:$0xff] %v2003_v32 }
 0x26f   : > { %2104 = vst [vmem:[%s3503_s13 + $0x118] sm:$0xff] %v2004_v33 }
 0x271   : > { %v1781_v60 = vpop.f32.mrf.mxu2 }
 0x272   : > { %v1782_v34 = vadd.f32 %v1781_v60, %v3713_v27  ;;  %v1854_v37 = vpop.f32.mrf.mxu3 }
 0x273   : > { %v1855_v50 = vadd.f32 %v1854_v37, %v3721_v18  ;;  %v1711_v38 = vpop.f32.mrf.mxu1 }
 0x274   : > { %v2007_v54 = vpack.c.bf16 %v1782_v34, %v1709_v11  ;;  %v1930_v59 = vpop.f32.mrf.mxu0  ;;  %v1712_v61 = vadd.f32 %v1711_v38, %v3708_v1 }
 0x275   : > { %v2008_v42 = vpack.c.bf16 %v1928_v5, %v1855_v50  ;;  %v1931_v45 = vadd.f32 %v1930_v59, %v3716_v25 }
 0x276   : > { %2107 = vst [vmem:[%s3503_s13 + $0x130] sm:$0xff] %v2007_v54 }
 0x277   : > { %2108 = vst [vmem:[%s3503_s13 + $0x138] sm:$0xff] %v2008_v42 }
 0x279   : > { %v1784_v29 = vpop.f32.mrf.mxu2 }
 0x27a   : > { %v1785_v39 = vadd.f32 %v1784_v29, %v3713_v27  ;;  %v1857_v41 = vpop.f32.mrf.mxu3 }
 0x27b   : > { %v1858_v46 = vadd.f32 %v1857_v41, %v3721_v18  ;;  %v1713_v48 = vpop.f32.mrf.mxu1 }
 0x27c   : > { %v2011_v47 = vpack.c.bf16 %v1785_v39, %v1712_v61  ;;  %v1932_v49 = vpop.f32.mrf.mxu0  ;;  %v1714_v40 = vadd.f32 %v1713_v48, %v3708_v1 }
 0x27d   : > { %v2012_v51 = vpack.c.bf16 %v1931_v45, %v1858_v46  ;;  %v1933_v58 = vadd.f32 %v1932_v49, %v3716_v25 }
 0x27e   : > { %2111 = vst [vmem:[%s3503_s13 + $0x150] sm:$0xff] %v2011_v47 }
 0x27f   : > { %2112 = vst [vmem:[%s3503_s13 + $0x158] sm:$0xff] %v2012_v51 }
 0x281   : > { %v1786_v53 = vpop.f32.mrf.mxu2 }
 0x282   : > { %v1787_v56 = vadd.f32 %v1786_v53, %v3713_v27  ;;  %v1859_v57 = vpop.f32.mrf.mxu3 }
 0x283   : > { %v1860_v62 = vadd.f32 %v1859_v57, %v3721_v18  ;;  %v1716_v63 = vpop.f32.mrf.mxu1 }
 0x284   : > { %v2015_v21 = vpack.c.bf16 %v1787_v56, %v1714_v40  ;;  %v1935_v52 = vpop.f32.mrf.mxu0  ;;  %v1717_v7 = vadd.f32 %v1716_v63, %v3708_v1 }
 0x285   : > { %v2016_v2 = vpack.c.bf16 %v1933_v58, %v1860_v62  ;;  %v1936_v12 = vadd.f32 %v1935_v52, %v3716_v25 }
 0x286   : > { %2115 = vst [vmem:[%s3503_s13 + $0x170] sm:$0xff] %v2015_v21 }
 0x287   : > { %2116 = vst [vmem:[%s3503_s13 + $0x178] sm:$0xff] %v2016_v2 }
 0x289   : > { %v1789_v36 = vpop.f32.mrf.mxu2 }
 0x28a   : > { %v1790_v8 = vadd.f32 %v1789_v36, %v3713_v27  ;;  %v1862_v9 = vpop.f32.mrf.mxu3 }
 0x28b   : > { %v1863_v13 = vadd.f32 %v1862_v9, %v3721_v18  ;;  %v1718_v14 = vpop.f32.mrf.mxu1 }
 0x28c   : > { %v2019_v15 = vpack.c.bf16 %v1790_v8, %v1717_v7  ;;  %v1937_v22 = vpop.f32.mrf.mxu0  ;;  %v1719_v6 = vadd.f32 %v1718_v14, %v3708_v1 }
 0x28d   : > { %v2020_v10 = vpack.c.bf16 %v1936_v12, %v1863_v13  ;;  %v1938_v17 = vadd.f32 %v1937_v22, %v3716_v25 }
 0x28e   : > { %2119 = vst [vmem:[%s3503_s13 + $0x190] sm:$0xff] %v2019_v15 }
 0x28f   : > { %2120 = vst [vmem:[%s3503_s13 + $0x198] sm:$0xff] %v2020_v10 }
 0x291   : > { %v1791_v16 = vpop.f32.mrf.mxu2 }
 0x292   : > { %v1792_v3 = vadd.f32 %v1791_v16, %v3713_v27  ;;  %v1864_v55 = vpop.f32.mrf.mxu3 }
 0x293   : > { %v1865_v19 = vadd.f32 %v1864_v55, %v3721_v18  ;;  %v1721_v20 = vpop.f32.mrf.mxu1 }
 0x294   : > { %v2023_v23 = vpack.c.bf16 %v1792_v3, %v1719_v6  ;;  %v1940_v24 = vpop.f32.mrf.mxu0  ;;  %v1722_v4 = vadd.f32 %v1721_v20, %v3708_v1 }
 0x295   : > { %v2024_v35 = vpack.c.bf16 %v1938_v17, %v1865_v19  ;;  %v1941_v43 = vadd.f32 %v1940_v24, %v3716_v25 }
 0x296   : > { %2123 = vst [vmem:[%s3503_s13 + $0x1b0] sm:$0xff] %v2023_v23 }
 0x297   : > { %2124 = vst [vmem:[%s3503_s13 + $0x1b8] sm:$0xff] %v2024_v35 }
 0x299   : > { %v1794_v26 = vpop.f32.mrf.mxu2 }
 0x29a   : > { %v1795_v28 = vadd.f32 %v1794_v26, %v3713_v27  ;;  %v1867_v30 = vpop.f32.mrf.mxu3 }
 0x29b   : > { %v1868_v44 = vadd.f32 %v1867_v30, %v3721_v18  ;;  %v1723_v31 = vpop.f32.mrf.mxu1 }
 0x29c   : > { %v2027_v32 = vpack.c.bf16 %v1795_v28, %v1722_v4  ;;  %v1942_v0 = vpop.f32.mrf.mxu0  ;;  %v1724_v11 = vadd.f32 %v1723_v31, %v3708_v1 }
 0x29d   : > { %v2028_v33 = vpack.c.bf16 %v1941_v43, %v1868_v44  ;;  %v1943_v5 = vadd.f32 %v1942_v0, %v3716_v25 }
 0x29e   : > { %2127 = vst [vmem:[%s3503_s13 + $0x1d0] sm:$0xff] %v2027_v32 }
 0x29f   : > { %2128 = vst [vmem:[%s3503_s13 + $0x1d8] sm:$0xff] %v2028_v33 }
 0x2a1   : > { %v1796_v60 = vpop.f32.mrf.mxu2 }
 0x2a2   : > { %v1797_v34 = vadd.f32 %v1796_v60, %v3713_v27  ;;  %v1869_v37 = vpop.f32.mrf.mxu3 }
 0x2a3   : > { %v1870_v50 = vadd.f32 %v1869_v37, %v3721_v18  ;;  %v1726_v38 = vpop.f32.mrf.mxu1 }
 0x2a4   : > { %v2031_v54 = vpack.c.bf16 %v1797_v34, %v1724_v11  ;;  %v1945_v59 = vpop.f32.mrf.mxu0  ;;  %v1727_v61 = vadd.f32 %v1726_v38, %v3708_v1 }
 0x2a5   : > { %v2032_v42 = vpack.c.bf16 %v1943_v5, %v1870_v50  ;;  %v1946_v45 = vadd.f32 %v1945_v59, %v3716_v25 }
 0x2a6   : > { %2131 = vst [vmem:[%s3503_s13 + $0x1f0] sm:$0xff] %v2031_v54 }
 0x2a7   : > { %2132 = vst [vmem:[%s3503_s13 + $0x1f8] sm:$0xff] %v2032_v42 }
 0x2a9   : > { %v1799_v29 = vpop.f32.mrf.mxu2 }
 0x2aa   : > { %v1800_v39 = vadd.f32 %v1799_v29, %v3713_v27  ;;  %v1872_v41 = vpop.f32.mrf.mxu3 }
 0x2ab   : > { %v1873_v46 = vadd.f32 %v1872_v41, %v3721_v18  ;;  %v1728_v48 = vpop.f32.mrf.mxu1 }
 0x2ac   : > { %v2035_v47 = vpack.c.bf16 %v1800_v39, %v1727_v61  ;;  %v1947_v49 = vpop.f32.mrf.mxu0  ;;  %v1729_v40 = vadd.f32 %v1728_v48, %v3708_v1 }
 0x2ad   : > { %v2036_v51 = vpack.c.bf16 %v1946_v45, %v1873_v46  ;;  %v1948_v58 = vadd.f32 %v1947_v49, %v3716_v25 }
 0x2ae   : > { %2135 = vst [vmem:[%s3503_s13 + $0x210] sm:$0xff] %v2035_v47 }
 0x2af   : > { %2136 = vst [vmem:[%s3503_s13 + $0x218] sm:$0xff] %v2036_v51 }
 0x2b1   : > { %v1801_v53 = vpop.f32.mrf.mxu2 }
 0x2b2   : > { %v1802_v56 = vadd.f32 %v1801_v53, %v3713_v27  ;;  %v1874_v57 = vpop.f32.mrf.mxu3 }
 0x2b3   : > { %v1875_v62 = vadd.f32 %v1874_v57, %v3721_v18  ;;  %v1731_v63 = vpop.f32.mrf.mxu1 }
 0x2b4   : > { %v2039_v21 = vpack.c.bf16 %v1802_v56, %v1729_v40  ;;  %v1950_v52 = vpop.f32.mrf.mxu0  ;;  %v1732_v7 = vadd.f32 %v1731_v63, %v3708_v1 }
 0x2b5   : > { %v2040_v2 = vpack.c.bf16 %v1948_v58, %v1875_v62  ;;  %v1951_v12 = vadd.f32 %v1950_v52, %v3716_v25 }
 0x2b6   : > { %2139 = vst [vmem:[%s3503_s13 + $0x230] sm:$0xff] %v2039_v21 }
 0x2b7   : > { %2140 = vst [vmem:[%s3503_s13 + $0x238] sm:$0xff] %v2040_v2 }
 0x2b9   : > { %v1804_v36 = vpop.f32.mrf.mxu2 }
 0x2ba   : > { %v1805_v8 = vadd.f32 %v1804_v36, %v3713_v27  ;;  %v1877_v9 = vpop.f32.mrf.mxu3 }
 0x2bb   : > { %v1878_v13 = vadd.f32 %v1877_v9, %v3721_v18  ;;  %v1733_v14 = vpop.f32.mrf.mxu1 }
 0x2bc   : > { %v2043_v15 = vpack.c.bf16 %v1805_v8, %v1732_v7  ;;  %v1952_v22 = vpop.f32.mrf.mxu0  ;;  %v1734_v6 = vadd.f32 %v1733_v14, %v3708_v1 }
 0x2bd   : > { %v2044_v10 = vpack.c.bf16 %v1951_v12, %v1878_v13  ;;  %v1953_v17 = vadd.f32 %v1952_v22, %v3716_v25 }
 0x2be   : > { %2143 = vst [vmem:[%s3503_s13 + $0x250] sm:$0xff] %v2043_v15 }
 0x2bf   : > { %2144 = vst [vmem:[%s3503_s13 + $0x258] sm:$0xff] %v2044_v10 }
 0x2c1   : > { %v1806_v16 = vpop.f32.mrf.mxu2 }
 0x2c2   : > { %v1807_v3 = vadd.f32 %v1806_v16, %v3713_v27  ;;  %v1879_v55 = vpop.f32.mrf.mxu3 }
 0x2c3   : > { %v1880_v19 = vadd.f32 %v1879_v55, %v3721_v18  ;;  %v1736_v20 = vpop.f32.mrf.mxu1 }
 0x2c4   : > { %v2047_v23 = vpack.c.bf16 %v1807_v3, %v1734_v6  ;;  %v1955_v24 = vpop.f32.mrf.mxu0  ;;  %v1737_v4 = vadd.f32 %v1736_v20, %v3708_v1 }
 0x2c5   : > { %v2048_v35 = vpack.c.bf16 %v1953_v17, %v1880_v19  ;;  %v1956_v43 = vadd.f32 %v1955_v24, %v3716_v25 }
 0x2c6   : > { %2147 = vst [vmem:[%s3503_s13 + $0x270] sm:$0xff] %v2047_v23 }
 0x2c7   : > { %2148 = vst [vmem:[%s3503_s13 + $0x278] sm:$0xff] %v2048_v35 }
 0x2c9   : > { %v1809_v26 = vpop.f32.mrf.mxu2 }
 0x2ca   : > { %v1810_v28 = vadd.f32 %v1809_v26, %v3713_v27  ;;  %v1882_v30 = vpop.f32.mrf.mxu3 }
 0x2cb   : > { %v1883_v44 = vadd.f32 %v1882_v30, %v3721_v18  ;;  %v1738_v31 = vpop.f32.mrf.mxu1 }
 0x2cc   : > { %v2051_v32 = vpack.c.bf16 %v1810_v28, %v1737_v4  ;;  %v1957_v0 = vpop.f32.mrf.mxu0  ;;  %v1739_v11 = vadd.f32 %v1738_v31, %v3708_v1 }
 0x2cd   : > { %v2052_v33 = vpack.c.bf16 %v1956_v43, %v1883_v44  ;;  %v1958_v5 = vadd.f32 %v1957_v0, %v3716_v25 }
 0x2ce   : > { %2151 = vst [vmem:[%s3503_s13 + $0x290] sm:$0xff] %v2051_v32 }
 0x2cf   : > { %2152 = vst [vmem:[%s3503_s13 + $0x298] sm:$0xff] %v2052_v33 }
 0x2d1   : > { %v1811_v60 = vpop.f32.mrf.mxu2 }
 0x2d2   : > { %v1812_v34 = vadd.f32 %v1811_v60, %v3713_v27  ;;  %v1884_v37 = vpop.f32.mrf.mxu3 }
 0x2d3   : > { %v1885_v50 = vadd.f32 %v1884_v37, %v3721_v18  ;;  %v1741_v38 = vpop.f32.mrf.mxu1 }
 0x2d4   : > { %v2055_v54 = vpack.c.bf16 %v1812_v34, %v1739_v11  ;;  %v1960_v59 = vpop.f32.mrf.mxu0  ;;  %v1742_v61 = vadd.f32 %v1741_v38, %v3708_v1 }
 0x2d5   : > { %v2056_v42 = vpack.c.bf16 %v1958_v5, %v1885_v50  ;;  %v1961_v45 = vadd.f32 %v1960_v59, %v3716_v25 }
 0x2d6   : > { %2155 = vst [vmem:[%s3503_s13 + $0x2b0] sm:$0xff] %v2055_v54 }
 0x2d7   : > { %2156 = vst [vmem:[%s3503_s13 + $0x2b8] sm:$0xff] %v2056_v42 }
 0x2d9   : > { %v1814_v29 = vpop.f32.mrf.mxu2 }
 0x2da   : > { %v1815_v39 = vadd.f32 %v1814_v29, %v3713_v27  ;;  %v1887_v41 = vpop.f32.mrf.mxu3 }
 0x2db   : > { %v1888_v46 = vadd.f32 %v1887_v41, %v3721_v18  ;;  %v1743_v48 = vpop.f32.mrf.mxu1 }
 0x2dc   : > { %v2059_v47 = vpack.c.bf16 %v1815_v39, %v1742_v61  ;;  %v1962_v49 = vpop.f32.mrf.mxu0  ;;  %v1744_v40 = vadd.f32 %v1743_v48, %v3708_v1 }
 0x2dd   : > { %v2060_v51 = vpack.c.bf16 %v1961_v45, %v1888_v46  ;;  %v1963_v58 = vadd.f32 %v1962_v49, %v3716_v25 }
 0x2de   : > { %2159 = vst [vmem:[%s3503_s13 + $0x2d0] sm:$0xff] %v2059_v47 }
 0x2df   : > { %2160 = vst [vmem:[%s3503_s13 + $0x2d8] sm:$0xff] %v2060_v51 }
 0x2e1   : > { %v1816_v53 = vpop.f32.mrf.mxu2 }
 0x2e2   : > { %v1817_v56 = vadd.f32 %v1816_v53, %v3713_v27  ;;  %v1889_v57 = vpop.f32.mrf.mxu3 }
 0x2e3   : > { %v1890_v62 = vadd.f32 %v1889_v57, %v3721_v18  ;;  %v1746_v63 = vpop.f32.mrf.mxu1 }
 0x2e4   : > { %v2063_v21 = vpack.c.bf16 %v1817_v56, %v1744_v40  ;;  %v1965_v52 = vpop.f32.mrf.mxu0  ;;  %v1747_v7 = vadd.f32 %v1746_v63, %v3708_v1 }
 0x2e5   : > { %v2064_v2 = vpack.c.bf16 %v1963_v58, %v1890_v62  ;;  %v1966_v12 = vadd.f32 %v1965_v52, %v3716_v25 }
 0x2e6   : > { %2163 = vst [vmem:[%s3503_s13 + $0x2f0] sm:$0xff] %v2063_v21 }
 0x2e7   : > { %2164 = vst [vmem:[%s3503_s13 + $0x2f8] sm:$0xff] %v2064_v2 }
 0x2e9   : > { %v1819_v36 = vpop.f32.mrf.mxu2 }
 0x2ea   : > { %v1820_v8 = vadd.f32 %v1819_v36, %v3713_v27  ;;  %v1892_v9 = vpop.f32.mrf.mxu3 }
 0x2eb   : > { %v1893_v13 = vadd.f32 %v1892_v9, %v3721_v18  ;;  %v1748_v14 = vpop.f32.mrf.mxu1 }
 0x2ec   : > { %v2067_v15 = vpack.c.bf16 %v1820_v8, %v1747_v7  ;;  %v1967_v22 = vpop.f32.mrf.mxu0 }
 0x2ed   : > { %v2068_v10 = vpack.c.bf16 %v1966_v12, %v1893_v13 }
 0x2ee   : > { %2167 = vst [vmem:[%s3503_s13 + $0x310] sm:$0xff] %v2067_v15 }
 0x2ef   : > { %2168 = vst [vmem:[%s3503_s13 + $0x318] sm:$0xff] %v2068_v10 }
 0x2f0   : > { %3101 = shalt.err (!%p3098_p9)
}
 0x2f1   : > { %s3162_s8 = smov 512   ;;  %s3163_s13 = smov 32   ;;  %v1821_v1 = vpop.f32.mrf.mxu2 }
 0x2f2   : > { %2923 = dma.vmem_to_hbm [thread:$0]  (%p3239_p4), %s2188_s19, 12800, %s2190_s24, %s2170_s20, %s3162_s8, %s3162_s8, %s3163_s13   ;;  %v1894_v27 = vpop.f32.mrf.mxu3 }
 0x2f3 PF: > { %p2935_p10 = scmp.ge.s32.totalorder %s3156_s26, 2  ;;  %s2204_s15 = sand.u32 1, %s3136_s21  }
 0x2f4   : > { %s2205_s16 = scalar_lea.sflag [#allocation5], %s2204_s15 }
 0x2f5   : > { %p2930_p11 = pnand %p2935_p10, %p3246_p8 }
 0x2f7   : > { %p2931_p12 = pneg %p2930_p11 }
 0x2f9   : > { %3131 = dma.done.wait (%p2931_p12), %s2205_s16, 12800  }
 0x2fa   : > { %3133 = vsyncadd (%p2931_p12), %s2205_s16, 4294954496  ;;  %s20_s26 = sadd.s32 1, %s3156_s26   ;;  %s3937_s21 = smov %s3140_s22 }
 0x2fb   : > { %p17_p13 = scmp.ge.s32.totalorder %s20_s26, 4   ;;  %s3938_s22 = smov %s3144_s23 }
 0x2fc   : > { %s3939_s23 = smov %s3252_s10  ;;  %s3940_s24 = smov %s3152_s25 }
 0x2fd   : > { %s3941_s25 = smov %s3943_s29  ;;  %19 = sbr.rel (!%p17_p13) target bundleno = 5 (0x5), region = 98 }
 0x302   :  { %2211 = vsyncpa [#allocation4], 1 }
 0x303   :  { %2213 = vsyncpa [#allocation4 + $0x1], 1 }
 0x304   :  { %2214 = vsyncpa [#allocation5], 1 }
 0x305   :  { %2216 = vsyncpa [#allocation5 + $0x1], 1 }

</bundles_post_ra>
